<compile_context>
chip_gen: v7x
topology: tpu7x:2x2x1
jax: 0.10.0
libtpu: 0.0.40
codegen_flags: <defaults>
</compile_context>

<pallas_src>
import functools

import jax
import jax.numpy as jnp
from jax.experimental import pallas as pl
from jax.experimental.pallas import tpu as pltpu

EPS = 1e-5
IN_DIM = 28 * 28      # 784
HIDDEN = 128
LATENT = 2


def _round_up(x, m):
    return ((x + m - 1) // m) * m


def _hw_budget():
    """(vmem_limit_bytes, max batch tile) per TPU generation; conservative fallback."""
    vmem_cap = 64 * 1024 * 1024
    try:
        info = pltpu.get_tpu_info()
        vmem_cap = int(getattr(info, "vmem_capacity_bytes", vmem_cap))
    except Exception:
        pass
    if vmem_cap > 64 * 1024 * 1024:            # v5e / v6e: 128 MiB physical VMEM
        return 64 * 1024 * 1024, 4096
    return 32 * 1024 * 1024, 2048              # v7x-class: 64 MiB physical VMEM


def _bn_train(h, gamma, beta):
    """Training-mode BatchNorm1d (whole batch, biased variance)."""
    mu = jnp.mean(h, axis=0, keepdims=True)
    var = jnp.mean((h - mu) * (h - mu), axis=0, keepdims=True)
    return (h - mu) * jax.lax.rsqrt(var + EPS) * gamma + beta


# ---------------------------------------------------------------------------
# Fused whole-batch kernel (small-batch fast path): everything VMEM-resident.
# ---------------------------------------------------------------------------
def _fused_kernel(x_ref, w1_ref, b1_ref, g1_ref, be1_ref,
                  w2_ref, b2_ref, g2_ref, be2_ref,
                  w3_ref, b3_ref, g3_ref, be3_ref,
                  w4_ref, b4_ref, out_ref):
    a1 = jnp.maximum(
        jnp.dot(x_ref[...], w1_ref[...], preferred_element_type=jnp.float32) + b1_ref[...],
        0.0)
    h1 = _bn_train(a1, g1_ref[...], be1_ref[...])
    z = jnp.dot(h1, w2_ref[...], preferred_element_type=jnp.float32) + b2_ref[...]
    h2 = _bn_train(z, g2_ref[...], be2_ref[...])
    d = jnp.maximum(
        jnp.dot(h2, w3_ref[...], preferred_element_type=jnp.float32) + b3_ref[...],
        0.0)
    h3 = _bn_train(d, g3_ref[...], be3_ref[...])
    out_ref[...] = jax.nn.sigmoid(
        jnp.dot(h3, w4_ref[...], preferred_element_type=jnp.float32) + b4_ref[...])


def _fused_forward(x, p, vmem_limit):
    B = x.shape[0]
    H = p["w1"].shape[1]
    L = p["w2"].shape[1]
    O = p["w4"].shape[1]

    # Pad the latent axis to a full 128-lane width (exact: padded z columns are 0,
    # BN maps them to 0, and the padded rows of w3 are 0 so nothing leaks downstream).
    Lp = _round_up(max(L, 128), 128)
    pad_cols = lambda a: jnp.pad(a, ((0, 0), (0, Lp - L)))
    w2p = pad_cols(p["w2"])
    b2p = pad_cols(p["b2"])
    be2p = pad_cols(p["be2"])
    g2p = jnp.pad(p["g2"], ((0, 0), (0, Lp - L)), constant_values=1.0)
    w3p = jnp.pad(p["w3"], ((0, Lp - L), (0, 0)))

    return pl.pallas_call(
        _fused_kernel,
        out_shape=jax.ShapeDtypeStruct((B, O), jnp.float32),
        compiler_params=pltpu.CompilerParams(vmem_limit_bytes=vmem_limit),
    )(x, p["w1"], p["b1"], p["g1"], p["be1"],
      w2p, b2p, g2p, be2p,
      w3p, p["b3"], p["g3"], p["be3"],
      p["w4"], p["b4"])


# ---------------------------------------------------------------------------
# Tiled path, kernel 1: a1 = relu(x @ W1 + b1) + per-tile BN partials (sum, sumsq).
# ---------------------------------------------------------------------------
def _encoder_front_kernel(x_ref, w1_ref, b1_ref, a1_ref, stats_ref, *, tb, batch):
    i = pl.program_id(0)

    a1 = jnp.dot(x_ref[...], w1_ref[...], preferred_element_type=jnp.float32)
    a1 = jnp.maximum(a1 + b1_ref[...], 0.0)               # (TB, H), f32 accumulator
    a1_ref[...] = a1.astype(a1_ref.dtype)                  # ragged OOB rows are dropped

    # One-pass BN partials.  Rows past the true batch (ragged last tile) contain
    # undefined data, so mask with jnp.where (never multiply undefined values).
    rows = jax.lax.broadcasted_iota(jnp.int32, (tb, 1), 0) + i * tb
    valid = rows < batch
    s = jnp.sum(jnp.where(valid, a1, 0.0), axis=0, keepdims=True)        # (1, H)
    q = jnp.sum(jnp.where(valid, a1 * a1, 0.0), axis=0, keepdims=True)   # (1, H)
    stats_ref[0] = jnp.concatenate([s, q], axis=0)          # (2, H)


# ---------------------------------------------------------------------------
# Tiled path, kernel 2: recon = sigmoid(d @ W4f + b4f)   (BN3 folded into W4f/b4f).
# ---------------------------------------------------------------------------
def _decoder_back_kernel(d_ref, w4_ref, b4_ref, out_ref):
    r = jnp.dot(d_ref[...], w4_ref[...], preferred_element_type=jnp.float32)
    out_ref[...] = jax.nn.sigmoid(r + b4_ref[...]).astype(out_ref.dtype)


def _tiled_forward(x, p, tb, use_bf16, vmem_limit):
    B = x.shape[0]
    D, H = p["w1"].shape          # (784, 128)
    O = p["w4"].shape[1]          # 784
    nb = pl.cdiv(B, tb)           # ragged last tile handled by Pallas + in-kernel mask
    mm_dtype = jnp.bfloat16 if use_bf16 else jnp.float32
    mm_bytes = 2 if use_bf16 else 4

    cparams = pltpu.CompilerParams(
        dimension_semantics=("parallel",),        # batch tiles shardable across TCs (v7x)
        vmem_limit_bytes=vmem_limit,
    )

    # ---- Pass 1 (Pallas): 784 -> 128 matmul + ReLU + per-tile BN1 partials ----
    a1, stats = pl.pallas_call(
        functools.partial(_encoder_front_kernel, tb=tb, batch=B),
        grid=(nb,),
        in_specs=[
            pl.BlockSpec((tb, D), lambda i: (i, 0)),        # x tile (double-buffered)
            pl.BlockSpec((D, H), lambda i: (0, 0)),         # W1 resident in VMEM
            pl.BlockSpec((1, H), lambda i: (0, 0)),         # b1 resident
        ],
        out_specs=(
            pl.BlockSpec((tb, H), lambda i: (i, 0)),        # a1 tile
            pl.BlockSpec((1, 2, H), lambda i: (i, 0, 0)),   # per-tile [sum; sumsq]
        ),
        out_shape=(
            jax.ShapeDtypeStruct((B, H), jnp.float32),
            jax.ShapeDtypeStruct((nb, 2, H), jnp.float32),
        ),
        compiler_params=cparams,
        cost_estimate=pl.CostEstimate(
            flops=2 * B * D * H + 6 * B * H,
            transcendentals=0,
            bytes_accessed=mm_bytes * (B * D + D * H) + 4 * (H + B * H + nb * 2 * H),
        ),
    )(x.astype(mm_dtype), p["w1"].astype(mm_dtype), p["b1"])

    # ---- Glue (plain JAX, tiny): exact whole-batch BN stats + latent path ----
    ssum = jnp.sum(stats[:, 0, :], axis=0)                   # (H,)
    sqsum = jnp.sum(stats[:, 1, :], axis=0)                  # (H,)
    mu1 = ssum / B
    var1 = jnp.maximum(sqsum / B - mu1 * mu1, 0.0)           # biased var, clamp >= 0
    scale1 = jax.lax.rsqrt(var1 + EPS) * p["g1"][0]
    shift1 = p["be1"][0] - mu1 * scale1

    # Linear(H -> latent) with BN1 folded into the weight / bias.
    w2f = scale1[:, None] * p["w2"]                          # (H, L)
    b2f = shift1 @ p["w2"] + p["b2"][0]                      # (L,)
    z = a1 @ w2f + b2f                                       # (B, L)

    # BatchNorm1d(latent), training mode.
    mu2 = jnp.mean(z, axis=0)
    var2 = jnp.mean((z - mu2) ** 2, axis=0)
    scale2 = jax.lax.rsqrt(var2 + EPS) * p["g2"][0]
    shift2 = p["be2"][0] - mu2 * scale2

    # Linear(latent -> H) + ReLU.
    d = jnp.maximum((z * scale2 + shift2) @ p["w3"] + p["b3"][0], 0.0)   # (B, H)

    # BatchNorm1d(H) folded directly into the decoder weights (no h3 HBM pass).
    mu3 = jnp.mean(d, axis=0)
    var3 = jnp.mean((d - mu3) ** 2, axis=0)
    scale3 = jax.lax.rsqrt(var3 + EPS) * p["g3"][0]
    shift3 = p["be3"][0] - mu3 * scale3
    w4f = scale3[:, None] * p["w4"]                          # (H, O)
    b4f = (shift3 @ p["w4"] + p["b4"][0])[None, :]           # (1, O)

    # ---- Pass 2 (Pallas): 128 -> 784 matmul + sigmoid ----
    out = pl.pallas_call(
        _decoder_back_kernel,
        grid=(nb,),
        in_specs=[
            pl.BlockSpec((tb, H), lambda i: (i, 0)),         # d tile
            pl.BlockSpec((H, O), lambda i: (0, 0)),          # W4f resident in VMEM
            pl.BlockSpec((1, O), lambda i: (0, 0)),          # b4f resident
        ],
        out_specs=pl.BlockSpec((tb, O), lambda i: (i, 0)),
        out_shape=jax.ShapeDtypeStruct((B, O), jnp.float32),
        compiler_params=cparams,
        cost_estimate=pl.CostEstimate(
            flops=2 * B * H * O,
            transcendentals=B * O,
            bytes_accessed=mm_bytes * (B * H + H * O) + 4 * (O + B * O),
        ),
    )(d.astype(mm_dtype), w4f.astype(mm_dtype), b4f)

    return out


@functools.partial(jax.jit, static_argnames=("tb", "force_tiled", "use_bf16"))
def autoencoder_forward(x, params, *, tb=None, force_tiled=False, use_bf16=True):
    """x: (B, 784) float32 -> (B, 784) float32 reconstruction (training-mode BN).

    Small batches use a single fused whole-batch kernel (exact, f32).  Large batches
    use the batch-tiled two-pass pipeline; with use_bf16=True the big matmul operands
    are streamed in bf16 (f32 MXU accumulation, f32 BN statistics) for ~2x less HBM
    traffic, at the cost of ~1e-2-level output drift vs. a pure-f32 forward.
    """
    B = x.shape[0]
    vmem_limit, tb_cap = _hw_budget()

    if not force_tiled and B <= 1024:
        return _fused_forward(x, params, vmem_limit)

    # Batch tile selection: big tiles to amortize the ~0.35us/step overhead, capped by
    # the per-generation VMEM budget, rounded to the (8,*) sublane granule ...
    if tb is None:
        tb = tb_cap
    tb = max(8, min(_round_up(tb, 8), tb_cap))
    # ... and capped so the 'parallel' grid has >= 2 steps (v7x megacore utilization).
    if B > 8 and tb >= B:
        tb = max(8, _round_up(pl.cdiv(B, 2), 8))

    return _tiled_forward(x, params, tb, use_bf16, vmem_limit)


# ---------------------------------------------------------------------------
# Parameter init (PyTorch-default-like) and plain-JAX reference
# ---------------------------------------------------------------------------
def init_params(key, latent_dim=LATENT, hidden_size=HIDDEN):
    """Linear: U(-1/sqrt(fan_in), 1/sqrt(fan_in)); BatchNorm1d: weight=1, bias=0.
       Weights stored pre-transposed as (in_features, out_features)."""
    def linear(k, fan_in, fan_out):
        kw, kb = jax.random.split(k)
        bound = 1.0 / jnp.sqrt(fan_in)
        w = jax.random.uniform(kw, (fan_in, fan_out), jnp.float32, -bound, bound)
        b = jax.random.uniform(kb, (1, fan_out), jnp.float32, -bound, bound)
        return w, b

    k1, k2, k3, k4 = jax.random.split(key, 4)
    w1, b1 = linear(k1, IN_DIM, hidden_size)
    w2, b2 = linear(k2, hidden_size, latent_dim)
    w3, b3 = linear(k3, latent_dim, hidden_size)
    w4, b4 = linear(k4, hidden_size, IN_DIM)
    ones = lambda n: jnp.ones((1, n), jnp.float32)
    zeros = lambda n: jnp.zeros((1, n), jnp.float32)
    return {
        "w1": w1, "b1": b1, "g1": ones(hidden_size), "be1": zeros(hidden_size),
        "w2": w2, "b2": b2, "g2": ones(latent_dim), "be2": zeros(latent_dim),
        "w3": w3, "b3": b3, "g3": ones(hidden_size), "be3": zeros(hidden_size),
        "w4": w4, "b4": b4,
    }


def reference_forward(x, p):
    """Plain-JAX reference of the PyTorch forward (training-mode BN)."""
    h = jnp.maximum(x @ p["w1"] + p["b1"], 0.0)
    h = _bn_train(h, p["g1"], p["be1"])
    z = _bn_train(h @ p["w2"] + p["b2"], p["g2"], p["be2"])
    d = jnp.maximum(z @ p["w3"] + p["b3"], 0.0)
    d = _bn_train(d, p["g3"], p["be3"])
    return jax.nn.sigmoid(d @ p["w4"] + p["b4"])


# TODO(synk): training loop / Adam / data-loader methods (fit, train_one_epoch,
# evaluate, get_latent_embeddings) are host-side orchestration, not kernel work.

if __name__ == "__main__":
    key = jax.random.PRNGKey(0)
    k_params, k_x = jax.random.split(key)

    B = 40                                   # small demo batch; not a tile multiple
    params = init_params(k_params, latent_dim=LATENT, hidden_size=HIDDEN)
    x = jax.random.uniform(k_x, (B, IN_DIM), jnp.float32)   # MNIST-like pixels in [0, 1)

    ref = reference_forward(x, params)

    # Path 1: fused whole-batch kernel (default dispatch for small B) -- exact f32.
    out_fused = jax.block_until_ready(autoencoder_forward(x, params))
    assert out_fused.shape == (B, IN_DIM)
    err = float(jnp.max(jnp.abs(out_fused - ref)))
    assert jnp.allclose(out_fused, ref, atol=1e-4, rtol=1e-4), f"fused mismatch (max |err| = {err})"

    # Path 2: batch-tiled two-pass pipeline, f32 operands (exact); tb=16 over B=40
    # exercises a ragged last tile + the masked BN partial reduction.
    out_t32 = jax.block_until_ready(
        autoencoder_forward(x, params, tb=16, force_tiled=True, use_bf16=False))
    err = float(jnp.max(jnp.abs(out_t32 - ref)))
    assert jnp.allclose(out_t32, ref, atol=1e-4, rtol=1e-4), f"tiled f32 mismatch (max |err| = {err})"

    # Path 3: batch-tiled pipeline with bf16 operand storage (the large-batch default).
    out_tbf = jax.block_until_ready(
        autoencoder_forward(x, params, tb=16, force_tiled=True, use_bf16=True))
    err = float(jnp.max(jnp.abs(out_tbf - ref)))
    assert jnp.allclose(out_tbf, ref, atol=5e-2, rtol=5e-2), f"tiled bf16 mismatch (max |err| = {err})"

    print("KERNEL_OK")
</pallas_src>

<mosaic_0001>
module attributes {stable_mosaic.version = 11 : i64} {
  func.func @_fused_kernel(%arg0: memref<40x784xf32, #tpu.memory_space<vmem>>, %arg1: memref<784x128xf32, #tpu.memory_space<vmem>>, %arg2: memref<1x128xf32, #tpu.memory_space<vmem>>, %arg3: memref<1x128xf32, #tpu.memory_space<vmem>>, %arg4: memref<1x128xf32, #tpu.memory_space<vmem>>, %arg5: memref<128x128xf32, #tpu.memory_space<vmem>>, %arg6: memref<1x128xf32, #tpu.memory_space<vmem>>, %arg7: memref<1x128xf32, #tpu.memory_space<vmem>>, %arg8: memref<1x128xf32, #tpu.memory_space<vmem>>, %arg9: memref<128x128xf32, #tpu.memory_space<vmem>>, %arg10: memref<1x128xf32, #tpu.memory_space<vmem>>, %arg11: memref<1x128xf32, #tpu.memory_space<vmem>>, %arg12: memref<1x128xf32, #tpu.memory_space<vmem>>, %arg13: memref<128x784xf32, #tpu.memory_space<vmem>>, %arg14: memref<1x784xf32, #tpu.memory_space<vmem>>, %arg15: memref<40x784xf32, #tpu.memory_space<vmem>>) attributes {dimension_semantics = [], scalar_prefetch = 0 : i64, scratch_operands = 0 : i64, tpu.core_type = #tpu.core_type<tc>} {
    %c0 = arith.constant 0 : index
    %c0_0 = arith.constant 0 : index
    %0 = vector.load %arg0[%c0, %c0_0] : memref<40x784xf32, #tpu.memory_space<vmem>>, vector<40x784xf32>
    %c0_1 = arith.constant 0 : index
    %c0_2 = arith.constant 0 : index
    %1 = vector.load %arg1[%c0_1, %c0_2] : memref<784x128xf32, #tpu.memory_space<vmem>>, vector<784x128xf32>
    %cst = arith.constant dense<0.000000e+00> : vector<40x128xf32>
    %2 = tpu.matmul %0, %1, %cst {dimension_numbers = #tpu.dot_dimension_numbers<[1], [0], [0], [1], [0, 0, 1, 1], [], []>} : vector<40x784xf32>, vector<784x128xf32>, vector<40x128xf32> -> vector<40x128xf32>
    %c0_3 = arith.constant 0 : index
    %c0_4 = arith.constant 0 : index
    %3 = vector.load %arg2[%c0_3, %c0_4] : memref<1x128xf32, #tpu.memory_space<vmem>>, vector<1x128xf32>
    %4 = vector.broadcast %3 : vector<1x128xf32> to vector<40x128xf32>
    %5 = arith.addf %2, %4 : vector<40x128xf32>
    %cst_5 = arith.constant 0.000000e+00 : f32
    %6 = vector.broadcast %cst_5 : f32 to vector<40x128xf32>
    %7 = arith.maximumf %5, %6 : vector<40x128xf32>
    %c0_6 = arith.constant 0 : index
    %c0_7 = arith.constant 0 : index
    %8 = vector.load %arg3[%c0_6, %c0_7] : memref<1x128xf32, #tpu.memory_space<vmem>>, vector<1x128xf32>
    %c0_8 = arith.constant 0 : index
    %c0_9 = arith.constant 0 : index
    %9 = vector.load %arg4[%c0_8, %c0_9] : memref<1x128xf32, #tpu.memory_space<vmem>>, vector<1x128xf32>
    %cst_10 = arith.constant dense<0.000000e+00> : vector<128xf32>
    %10 = vector.multi_reduction <add>, %7, %cst_10 [0] : vector<40x128xf32> to vector<128xf32>
    %11 = vector.shape_cast %10 : vector<128xf32> to vector<1x128xf32>
    %cst_11 = arith.constant 4.000000e+01 : f32
    %12 = vector.broadcast %cst_11 : f32 to vector<1x128xf32>
    %13 = arith.divf %11, %12 : vector<1x128xf32>
    %14 = vector.broadcast %13 : vector<1x128xf32> to vector<40x128xf32>
    %15 = arith.subf %7, %14 : vector<40x128xf32>
    %16 = vector.broadcast %13 : vector<1x128xf32> to vector<40x128xf32>
    %17 = arith.subf %7, %16 : vector<40x128xf32>
    %18 = arith.mulf %15, %17 : vector<40x128xf32>
    %cst_12 = arith.constant dense<0.000000e+00> : vector<128xf32>
    %19 = vector.multi_reduction <add>, %18, %cst_12 [0] : vector<40x128xf32> to vector<128xf32>
    %20 = vector.shape_cast %19 : vector<128xf32> to vector<1x128xf32>
    %cst_13 = arith.constant 4.000000e+01 : f32
    %21 = vector.broadcast %cst_13 : f32 to vector<1x128xf32>
    %22 = arith.divf %20, %21 : vector<1x128xf32>
    %23 = vector.broadcast %13 : vector<1x128xf32> to vector<40x128xf32>
    %24 = arith.subf %7, %23 : vector<40x128xf32>
    %cst_14 = arith.constant 9.99999974E-6 : f32
    %25 = vector.broadcast %cst_14 : f32 to vector<1x128xf32>
    %26 = arith.addf %22, %25 : vector<1x128xf32>
    %27 = math.rsqrt %26 : vector<1x128xf32>
    %28 = vector.broadcast %27 : vector<1x128xf32> to vector<40x128xf32>
    %29 = arith.mulf %24, %28 : vector<40x128xf32>
    %30 = vector.broadcast %8 : vector<1x128xf32> to vector<40x128xf32>
    %31 = arith.mulf %29, %30 : vector<40x128xf32>
    %32 = vector.broadcast %9 : vector<1x128xf32> to vector<40x128xf32>
    %33 = arith.addf %31, %32 : vector<40x128xf32>
    %c0_15 = arith.constant 0 : index
    %c0_16 = arith.constant 0 : index
    %34 = vector.load %arg5[%c0_15, %c0_16] : memref<128x128xf32, #tpu.memory_space<vmem>>, vector<128x128xf32>
    %cst_17 = arith.constant dense<0.000000e+00> : vector<40x128xf32>
    %35 = tpu.matmul %33, %34, %cst_17 {dimension_numbers = #tpu.dot_dimension_numbers<[1], [0], [0], [1], [0, 0, 1, 1], [], []>} : vector<40x128xf32>, vector<128x128xf32>, vector<40x128xf32> -> vector<40x128xf32>
    %c0_18 = arith.constant 0 : index
    %c0_19 = arith.constant 0 : index
    %36 = vector.load %arg6[%c0_18, %c0_19] : memref<1x128xf32, #tpu.memory_space<vmem>>, vector<1x128xf32>
    %37 = vector.broadcast %36 : vector<1x128xf32> to vector<40x128xf32>
    %38 = arith.addf %35, %37 : vector<40x128xf32>
    %c0_20 = arith.constant 0 : index
    %c0_21 = arith.constant 0 : index
    %39 = vector.load %arg7[%c0_20, %c0_21] : memref<1x128xf32, #tpu.memory_space<vmem>>, vector<1x128xf32>
    %c0_22 = arith.constant 0 : index
    %c0_23 = arith.constant 0 : index
    %40 = vector.load %arg8[%c0_22, %c0_23] : memref<1x128xf32, #tpu.memory_space<vmem>>, vector<1x128xf32>
    %cst_24 = arith.constant dense<0.000000e+00> : vector<128xf32>
    %41 = vector.multi_reduction <add>, %38, %cst_24 [0] : vector<40x128xf32> to vector<128xf32>
    %42 = vector.shape_cast %41 : vector<128xf32> to vector<1x128xf32>
    %cst_25 = arith.constant 4.000000e+01 : f32
    %43 = vector.broadcast %cst_25 : f32 to vector<1x128xf32>
    %44 = arith.divf %42, %43 : vector<1x128xf32>
    %45 = vector.broadcast %44 : vector<1x128xf32> to vector<40x128xf32>
    %46 = arith.subf %38, %45 : vector<40x128xf32>
    %47 = vector.broadcast %44 : vector<1x128xf32> to vector<40x128xf32>
    %48 = arith.subf %38, %47 : vector<40x128xf32>
    %49 = arith.mulf %46, %48 : vector<40x128xf32>
    %cst_26 = arith.constant dense<0.000000e+00> : vector<128xf32>
    %50 = vector.multi_reduction <add>, %49, %cst_26 [0] : vector<40x128xf32> to vector<128xf32>
    %51 = vector.shape_cast %50 : vector<128xf32> to vector<1x128xf32>
    %cst_27 = arith.constant 4.000000e+01 : f32
    %52 = vector.broadcast %cst_27 : f32 to vector<1x128xf32>
    %53 = arith.divf %51, %52 : vector<1x128xf32>
    %54 = vector.broadcast %44 : vector<1x128xf32> to vector<40x128xf32>
    %55 = arith.subf %38, %54 : vector<40x128xf32>
    %cst_28 = arith.constant 9.99999974E-6 : f32
    %56 = vector.broadcast %cst_28 : f32 to vector<1x128xf32>
    %57 = arith.addf %53, %56 : vector<1x128xf32>
    %58 = math.rsqrt %57 : vector<1x128xf32>
    %59 = vector.broadcast %58 : vector<1x128xf32> to vector<40x128xf32>
    %60 = arith.mulf %55, %59 : vector<40x128xf32>
    %61 = vector.broadcast %39 : vector<1x128xf32> to vector<40x128xf32>
    %62 = arith.mulf %60, %61 : vector<40x128xf32>
    %63 = vector.broadcast %40 : vector<1x128xf32> to vector<40x128xf32>
    %64 = arith.addf %62, %63 : vector<40x128xf32>
    %c0_29 = arith.constant 0 : index
    %c0_30 = arith.constant 0 : index
    %65 = vector.load %arg9[%c0_29, %c0_30] : memref<128x128xf32, #tpu.memory_space<vmem>>, vector<128x128xf32>
    %cst_31 = arith.constant dense<0.000000e+00> : vector<40x128xf32>
    %66 = tpu.matmul %64, %65, %cst_31 {dimension_numbers = #tpu.dot_dimension_numbers<[1], [0], [0], [1], [0, 0, 1, 1], [], []>} : vector<40x128xf32>, vector<128x128xf32>, vector<40x128xf32> -> vector<40x128xf32>
    %c0_32 = arith.constant 0 : index
    %c0_33 = arith.constant 0 : index
    %67 = vector.load %arg10[%c0_32, %c0_33] : memref<1x128xf32, #tpu.memory_space<vmem>>, vector<1x128xf32>
    %68 = vector.broadcast %67 : vector<1x128xf32> to vector<40x128xf32>
    %69 = arith.addf %66, %68 : vector<40x128xf32>
    %cst_34 = arith.constant 0.000000e+00 : f32
    %70 = vector.broadcast %cst_34 : f32 to vector<40x128xf32>
    %71 = arith.maximumf %69, %70 : vector<40x128xf32>
    %c0_35 = arith.constant 0 : index
    %c0_36 = arith.constant 0 : index
    %72 = vector.load %arg11[%c0_35, %c0_36] : memref<1x128xf32, #tpu.memory_space<vmem>>, vector<1x128xf32>
    %c0_37 = arith.constant 0 : index
    %c0_38 = arith.constant 0 : index
    %73 = vector.load %arg12[%c0_37, %c0_38] : memref<1x128xf32, #tpu.memory_space<vmem>>, vector<1x128xf32>
    %cst_39 = arith.constant dense<0.000000e+00> : vector<128xf32>
    %74 = vector.multi_reduction <add>, %71, %cst_39 [0] : vector<40x128xf32> to vector<128xf32>
    %75 = vector.shape_cast %74 : vector<128xf32> to vector<1x128xf32>
    %cst_40 = arith.constant 4.000000e+01 : f32
    %76 = vector.broadcast %cst_40 : f32 to vector<1x128xf32>
    %77 = arith.divf %75, %76 : vector<1x128xf32>
    %78 = vector.broadcast %77 : vector<1x128xf32> to vector<40x128xf32>
    %79 = arith.subf %71, %78 : vector<40x128xf32>
    %80 = vector.broadcast %77 : vector<1x128xf32> to vector<40x128xf32>
    %81 = arith.subf %71, %80 : vector<40x128xf32>
    %82 = arith.mulf %79, %81 : vector<40x128xf32>
    %cst_41 = arith.constant dense<0.000000e+00> : vector<128xf32>
    %83 = vector.multi_reduction <add>, %82, %cst_41 [0] : vector<40x128xf32> to vector<128xf32>
    %84 = vector.shape_cast %83 : vector<128xf32> to vector<1x128xf32>
    %cst_42 = arith.constant 4.000000e+01 : f32
    %85 = vector.broadcast %cst_42 : f32 to vector<1x128xf32>
    %86 = arith.divf %84, %85 : vector<1x128xf32>
    %87 = vector.broadcast %77 : vector<1x128xf32> to vector<40x128xf32>
    %88 = arith.subf %71, %87 : vector<40x128xf32>
    %cst_43 = arith.constant 9.99999974E-6 : f32
    %89 = vector.broadcast %cst_43 : f32 to vector<1x128xf32>
    %90 = arith.addf %86, %89 : vector<1x128xf32>
    %91 = math.rsqrt %90 : vector<1x128xf32>
    %92 = vector.broadcast %91 : vector<1x128xf32> to vector<40x128xf32>
    %93 = arith.mulf %88, %92 : vector<40x128xf32>
    %94 = vector.broadcast %72 : vector<1x128xf32> to vector<40x128xf32>
    %95 = arith.mulf %93, %94 : vector<40x128xf32>
    %96 = vector.broadcast %73 : vector<1x128xf32> to vector<40x128xf32>
    %97 = arith.addf %95, %96 : vector<40x128xf32>
    %c0_44 = arith.constant 0 : index
    %c0_45 = arith.constant 0 : index
    %98 = vector.load %arg13[%c0_44, %c0_45] : memref<128x784xf32, #tpu.memory_space<vmem>>, vector<128x784xf32>
    %cst_46 = arith.constant dense<0.000000e+00> : vector<40x784xf32>
    %99 = tpu.matmul %97, %98, %cst_46 {dimension_numbers = #tpu.dot_dimension_numbers<[1], [0], [0], [1], [0, 0, 1, 1], [], []>} : vector<40x128xf32>, vector<128x784xf32>, vector<40x784xf32> -> vector<40x784xf32>
    %c0_47 = arith.constant 0 : index
    %c0_48 = arith.constant 0 : index
    %100 = vector.load %arg14[%c0_47, %c0_48] : memref<1x784xf32, #tpu.memory_space<vmem>>, vector<1x784xf32>
    %101 = vector.broadcast %100 : vector<1x784xf32> to vector<40x784xf32>
    %102 = arith.addf %99, %101 : vector<40x784xf32>
    %103 = arith.negf %102 : vector<40x784xf32>
    %104 = math.exp %103 : vector<40x784xf32>
    %cst_49 = arith.constant 1.000000e+00 : f32
    %105 = vector.broadcast %cst_49 : f32 to vector<40x784xf32>
    %106 = arith.addf %105, %104 : vector<40x784xf32>
    %107 = arith.divf %105, %106 : vector<40x784xf32>
    %c0_50 = arith.constant 0 : index
    %c0_51 = arith.constant 0 : index
    %108 = vector.load %arg15[%c0_50, %c0_51] : memref<40x784xf32, #tpu.memory_space<vmem>>, vector<40x784xf32>
    tpu.vector_store %arg15[%c0_50, %c0_51], %107 {strides = array<i32>} : memref<40x784xf32, #tpu.memory_space<vmem>>, vector<40x784xf32>,
    return
  }
}

</mosaic_0001>

<bundles_post_ra>
// kernel: autoencoder_forward.1
= control target key start
LH: loop header
LB: loop body
LE: loop exit
PB: predicated region body
PF: predicated region fallthrough
CT: control target
= control target key end

     0   :  { %s3798_s0 = inlined_call_operand.vmem [shape: f32[40,784], index: 0, kind: input, shape index: {}]   ;;  %s3799_s1 = inlined_call_operand.vmem [shape: f32[784,128], index: 1, kind: input, shape index: {}]   ;;  %s3800_s2 = inlined_call_operand.vmem [shape: f32[1,128], index: 2, kind: input, shape index: {}]   ;;  %s3801_s3 = inlined_call_operand.vmem [shape: f32[1,128], index: 3, kind: input, shape index: {}]   ;;  %s3802_s4 = inlined_call_operand.vmem [shape: f32[1,128], index: 4, kind: input, shape index: {}]   ;;  %s3803_s5 = inlined_call_operand.vmem [shape: f32[128,128], index: 5, kind: input, shape index: {}]   ;;  %s3804_s6 = inlined_call_operand.vmem [shape: f32[1,128], index: 6, kind: input, shape index: {}]   ;;  %s3805_s7 = inlined_call_operand.vmem [shape: f32[1,128], index: 7, kind: input, shape index: {}]   ;;  %s3806_s8 = inlined_call_operand.vmem [shape: f32[1,128], index: 8, kind: input, shape index: {}]   ;;  %s3807_s9 = inlined_call_operand.vmem [shape: f32[128,128], index: 9, kind: input, shape index: {}]   ;;  %s3808_s10 = inlined_call_operand.vmem [shape: f32[1,128], index: 10, kind: input, shape index: {}]   ;;  %s3809_s11 = inlined_call_operand.vmem [shape: f32[1,128], index: 11, kind: input, shape index: {}]   ;;  %s3810_s12 = inlined_call_operand.vmem [shape: f32[1,128], index: 12, kind: input, shape index: {}]   ;;  %s3811_s13 = inlined_call_operand.vmem [shape: f32[128,784], index: 13, kind: input, shape index: {}]   ;;  %s3812_s14 = inlined_call_operand.vmem [shape: f32[1,784], index: 14, kind: input, shape index: {}]   ;;  %s3813_s15 = inlined_call_operand.hbm [shape: f32[40,784], index: 15, kind: output, shape index: {}]  }
   0x1   :  { %v102_v0 = vld [vmem:[%s3799_s1 + $0x80] sm:$0xff]  ;;  %v103_v1 = vld [vmem:[%s3799_s1 + $0x88] sm:$0xff]  ;;  %v104_v11 = vld [vmem:[%s3799_s1 + $0x90] sm:$0xff] }
   0x2   :  { %v86_v2 = vld [vmem:[%s3799_s1] sm:$0xff]  ;;  %v2198_v3 = vpack.c.bf16 %v103_v1, %v102_v0  ;;  %v87_v4 = vld [vmem:[%s3799_s1 + $0x8] sm:$0xff]  ;;  %v105_v13 = vld [vmem:[%s3799_s1 + $0x98] sm:$0xff] }
   0x3   :  { %v134_v5 = vld [vmem:[%s3799_s1 + $0x180] sm:$0xff]  ;;  %v135_v6 = vld [vmem:[%s3799_s1 + $0x188] sm:$0xff]  ;;  %v2200_v7 = vpack.c.bf16 %v87_v4, %v86_v2  ;;  %v88_v14 = vld [vmem:[%s3799_s1 + $0x10] sm:$0xff]  ;;  %v2202_v16 = vpack.c.bf16 %v105_v13, %v104_v11 }
   0x4   :  { %v2230_v8 = vpack.c.bf16 %v135_v6, %v134_v5  ;;  %v118_v9 = vld [vmem:[%s3799_s1 + $0x100] sm:$0xff]  ;;  %v119_v10 = vld [vmem:[%s3799_s1 + $0x108] sm:$0xff]  ;;  %2199 = vmatprep.subr.bf16.mxu0 %v2198_v3  ;;  %v89_v15 = vld [vmem:[%s3799_s1 + $0x18] sm:$0xff] }
   0x5   :  { %v2232_v12 = vpack.c.bf16 %v119_v10, %v118_v9  ;;  %2201 = vmatpush3.bf16.msra.mxu0 %v2200_v7  ;;  %v2204_v17 = vpack.c.bf16 %v89_v15, %v88_v14  ;;  %v136_v18 = vld [vmem:[%s3799_s1 + $0x190] sm:$0xff]  ;;  %v137_v19 = vld [vmem:[%s3799_s1 + $0x198] sm:$0xff]  ;;  %v106_v23 = vld [vmem:[%s3799_s1 + $0xa0] sm:$0xff] }
   0x6   :  { %2231 = vmatprep.subr.bf16.mxu1 %v2230_v8  ;;  %v120_v20 = vld [vmem:[%s3799_s1 + $0x110] sm:$0xff]  ;;  %v2234_v21 = vpack.c.bf16 %v137_v19, %v136_v18  ;;  %v121_v22 = vld [vmem:[%s3799_s1 + $0x118] sm:$0xff]  ;;  %v107_v24 = vld [vmem:[%s3799_s1 + $0xa8] sm:$0xff]  ;;  %2203 = vmatprep.subr.bf16.mxu0 %v2202_v16 }
   0x7   :  { %2233 = vmatpush3.bf16.msra.mxu1 %v2232_v12  ;;  %v2236_v25 = vpack.c.bf16 %v121_v22, %v120_v20  ;;  %v2206_v26 = vpack.c.bf16 %v107_v24, %v106_v23  ;;  %v90_v27 = vld [vmem:[%s3799_s1 + $0x20] sm:$0xff]  ;;  %v91_v28 = vld [vmem:[%s3799_s1 + $0x28] sm:$0xff]  ;;  %v108_v35 = vld [vmem:[%s3799_s1 + $0xb0] sm:$0xff] }
   0x8   :  { %v138_v29 = vld [vmem:[%s3799_s1 + $0x1a0] sm:$0xff]  ;;  %2235 = vmatprep.subr.bf16.mxu1 %v2234_v21  ;;  %v139_v30 = vld [vmem:[%s3799_s1 + $0x1a8] sm:$0xff]  ;;  %v2208_v33 = vpack.c.bf16 %v91_v28, %v90_v27  ;;  %v109_v36 = vld [vmem:[%s3799_s1 + $0xb8] sm:$0xff] }
   0x9   :  { %v122_v31 = vld [vmem:[%s3799_s1 + $0x120] sm:$0xff]  ;;  %v123_v32 = vld [vmem:[%s3799_s1 + $0x128] sm:$0xff]  ;;  %2205 = vmatpush3.bf16.msra.mxu0 %v2204_v17  ;;  %v2238_v34 = vpack.c.bf16 %v139_v30, %v138_v29  ;;  %v92_v37 = vld [vmem:[%s3799_s1 + $0x30] sm:$0xff]  ;;  %v2210_v39 = vpack.c.bf16 %v109_v36, %v108_v35 }
   0xa   :  { %2207 = vmatprep.subr.bf16.mxu0 %v2206_v26  ;;  %v2240_v38 = vpack.c.bf16 %v123_v32, %v122_v31  ;;  %v93_v40 = vld [vmem:[%s3799_s1 + $0x38] sm:$0xff]  ;;  %v140_v41 = vld [vmem:[%s3799_s1 + $0x1b0] sm:$0xff]  ;;  %v110_v46 = vld [vmem:[%s3799_s1 + $0xc0] sm:$0xff] }
   0xb   :  { %2237 = vmatpush3.bf16.msra.mxu1 %v2236_v25  ;;  %v141_v42 = vld [vmem:[%s3799_s1 + $0x1b8] sm:$0xff]  ;;  %v124_v44 = vld [vmem:[%s3799_s1 + $0x130] sm:$0xff]  ;;  %v111_v47 = vld [vmem:[%s3799_s1 + $0xc8] sm:$0xff]  ;;  %v2212_v48 = vpack.c.bf16 %v93_v40, %v92_v37 }
   0xc   :  { %2239 = vmatprep.subr.bf16.mxu1 %v2238_v34  ;;  %v2242_v43 = vpack.c.bf16 %v141_v42, %v140_v41  ;;  %v125_v45 = vld [vmem:[%s3799_s1 + $0x138] sm:$0xff]  ;;  %v142_v49 = vld [vmem:[%s3799_s1 + $0x1c0] sm:$0xff]  ;;  %v143_v50 = vld [vmem:[%s3799_s1 + $0x1c8] sm:$0xff]  ;;  %v2214_v52 = vpack.c.bf16 %v111_v47, %v110_v46 }
   0xd   :  { %2209 = vmatpush3.bf16.msra.mxu0 %v2208_v33  ;;  %v2244_v51 = vpack.c.bf16 %v125_v45, %v124_v44  ;;  %v94_v53 = vld [vmem:[%s3799_s1 + $0x40] sm:$0xff]  ;;  %v95_v54 = vld [vmem:[%s3799_s1 + $0x48] sm:$0xff]  ;;  %v2246_v56 = vpack.c.bf16 %v143_v50, %v142_v49  ;;  %v112_v58 = vld [vmem:[%s3799_s1 + $0xd0] sm:$0xff] }
   0xe   :  { %2211 = vmatprep.subr.bf16.mxu0 %v2210_v39  ;;  %v126_v55 = vld [vmem:[%s3799_s1 + $0x140] sm:$0xff]  ;;  %v127_v57 = vld [vmem:[%s3799_s1 + $0x148] sm:$0xff]  ;;  %v113_v59 = vld [vmem:[%s3799_s1 + $0xd8] sm:$0xff]  ;;  %v2216_v62 = vpack.c.bf16 %v95_v54, %v94_v53 }
   0xf   :  { %2241 = vmatpush3.bf16.msra.mxu1 %v2240_v38  ;;  %v144_v60 = vld [vmem:[%s3799_s1 + $0x1d0] sm:$0xff]  ;;  %v145_v61 = vld [vmem:[%s3799_s1 + $0x1d8] sm:$0xff]  ;;  %v2248_v63 = vpack.c.bf16 %v127_v57, %v126_v55  ;;  %v2218_v0 = vpack.c.bf16 %v113_v59, %v112_v58  ;;  %v114_v6 = vld [vmem:[%s3799_s1 + $0xe0] sm:$0xff] }
  0x10   :  { %2243 = vmatprep.subr.bf16.mxu1 %v2242_v43  ;;  %v96_v1 = vld [vmem:[%s3799_s1 + $0x50] sm:$0xff]  ;;  %v97_v2 = vld [vmem:[%s3799_s1 + $0x58] sm:$0xff]  ;;  %v2250_v4 = vpack.c.bf16 %v145_v61, %v144_v60  ;;  %v115_v7 = vld [vmem:[%s3799_s1 + $0xe8] sm:$0xff] }
  0x11   :  { %2213 = vmatpush3.bf16.msra.mxu0 %v2212_v48  ;;  %v128_v3 = vld [vmem:[%s3799_s1 + $0x150] sm:$0xff]  ;;  %v129_v5 = vld [vmem:[%s3799_s1 + $0x158] sm:$0xff]  ;;  %v146_v8 = vld [vmem:[%s3799_s1 + $0x1e0] sm:$0xff]  ;;  %v2220_v10 = vpack.c.bf16 %v97_v2, %v96_v1  ;;  %v2222_v14 = vpack.c.bf16 %v115_v7, %v114_v6 }
  0x12   :  { %2215 = vmatprep.subr.bf16.mxu0 %v2214_v52  ;;  %v147_v9 = vld [vmem:[%s3799_s1 + $0x1e8] sm:$0xff]  ;;  %v98_v11 = vld [vmem:[%s3799_s1 + $0x60] sm:$0xff]  ;;  %v2252_v13 = vpack.c.bf16 %v129_v5, %v128_v3  ;;  %v116_v19 = vld [vmem:[%s3799_s1 + $0xf0] sm:$0xff]  ;;  %v2641_v52 = vmov 0.0|0.0  }
  0x13   :  { %2245 = vmatpush3.bf16.msra.mxu1 %v2244_v51  ;;  %v52_v12 = vld [vmem:[%s3798_s0 + $0x8] sm:$0xff]  ;;  %v130_v16 = vld [vmem:[%s3799_s1 + $0x160] sm:$0xff]  ;;  %v2254_v18 = vpack.c.bf16 %v147_v9, %v146_v8  ;;  %v117_v20 = vld [vmem:[%s3799_s1 + $0xf8] sm:$0xff] }
  0x14   :  { %2247 = vmatprep.subr.bf16.mxu1 %v2246_v56  ;;  %v99_v15 = vld [vmem:[%s3799_s1 + $0x68] sm:$0xff]  ;;  %271 = vmatprep.mubr.f32.mxu0 %v52_v12  ;;  %v54_v21 = vld [vmem:[%s3798_s0 + $0x18] sm:$0xff]  ;;  %v148_v22 = vld [vmem:[%s3799_s1 + $0x1f0] sm:$0xff]  ;;  %v2226_v26 = vpack.c.bf16 %v117_v20, %v116_v19 }
  0x15   :  { %2217 = vmatpush3.bf16.msra.mxu0 %v2216_v62  ;;  %v131_v17 = vld [vmem:[%s3799_s1 + $0x168] sm:$0xff]  ;;  %v149_v23 = vld [vmem:[%s3799_s1 + $0x1f8] sm:$0xff]  ;;  %361 = vmatprep.mubr.f32.mxu1 %v54_v21  ;;  %v2224_v24 = vpack.c.bf16 %v99_v15, %v98_v11  ;;  %v100_v27 = vld [vmem:[%s3799_s1 + $0x70] sm:$0xff] }
  0x16   :  { %2219 = vmatprep.subr.bf16.mxu0 %v2218_v0  ;;  %v2256_v25 = vpack.c.bf16 %v131_v17, %v130_v16  ;;  %v101_v28 = vld [vmem:[%s3799_s1 + $0x78] sm:$0xff]  ;;  %v132_v29 = vld [vmem:[%s3799_s1 + $0x170] sm:$0xff]  ;;  %v2258_v30 = vpack.c.bf16 %v149_v23, %v148_v22  ;;  %v166_v32 = vld [vmem:[%s3799_s1 + $0x280] sm:$0xff] }
  0x17   :  { %2249 = vmatpush3.bf16.msra.mxu1 %v2248_v63  ;;  %v133_v31 = vld [vmem:[%s3799_s1 + $0x178] sm:$0xff]  ;;  %v167_v33 = vld [vmem:[%s3799_s1 + $0x288] sm:$0xff]  ;;  %v2228_v34 = vpack.c.bf16 %v101_v28, %v100_v27  ;;  %v150_v37 = vld [vmem:[%s3799_s1 + $0x200] sm:$0xff] }
  0x18   :  { %2251 = vmatprep.subr.bf16.mxu1 %v2250_v4  ;;  %v2260_v35 = vpack.c.bf16 %v133_v31, %v132_v29  ;;  %v2262_v36 = vpack.c.bf16 %v167_v33, %v166_v32  ;;  %v151_v38 = vld [vmem:[%s3799_s1 + $0x208] sm:$0xff]  ;;  %v168_v39 = vld [vmem:[%s3799_s1 + $0x290] sm:$0xff]  ;;  %v169_v40 = vld [vmem:[%s3799_s1 + $0x298] sm:$0xff] }
  0x19   :  { %2221 = vmatpush3.bf16.msra.mxu0 %v2220_v10  ;;  %v182_v41 = vld [vmem:[%s3799_s1 + $0x300] sm:$0xff]  ;;  %v183_v42 = vld [vmem:[%s3799_s1 + $0x308] sm:$0xff]  ;;  %v2264_v44 = vpack.c.bf16 %v151_v38, %v150_v37  ;;  %v53_v45 = vld [vmem:[%s3798_s0 + $0x10] sm:$0xff]  ;;  %v2266_v46 = vpack.c.bf16 %v169_v40, %v168_v39 }
  0x1a   :  { %2223 = vmatprep.subr.bf16.mxu0 %v2222_v14  ;;  %v51_v43 = vld [vmem:[%s3798_s0] sm:$0xff]  ;;  %v152_v47 = vld [vmem:[%s3799_s1 + $0x210] sm:$0xff]  ;;  %v153_v48 = vld [vmem:[%s3799_s1 + $0x218] sm:$0xff]  ;;  %v2295_v53 = vpack.c.bf16 %v183_v42, %v182_v41 }
  0x1b   :  { %2253 = vmatpush3.bf16.msra.mxu1 %v2252_v13  ;;  %v170_v49 = vld [vmem:[%s3799_s1 + $0x2a0] sm:$0xff]  ;;  %v171_v50 = vld [vmem:[%s3799_s1 + $0x2a8] sm:$0xff]  ;;  %v61_v54 = vld [vmem:[%s3798_s0 + $0x50] sm:$0xff]  ;;  %v2268_v55 = vpack.c.bf16 %v153_v48, %v152_v47 }
  0x1c   :  { %2255 = vmatprep.subr.bf16.mxu1 %v2254_v18  ;;  %v59_v51 = vld [vmem:[%s3798_s0 + $0x40] sm:$0xff]  ;;  %v58_v56 = vld [vmem:[%s3798_s0 + $0x38] sm:$0xff]  ;;  %v2270_v57 = vpack.c.bf16 %v171_v50, %v170_v49  ;;  %v155_v59 = vld [vmem:[%s3799_s1 + $0x228] sm:$0xff] }
  0x1d   :  { %2225 = vmatpush3.bf16.msra.mxu0 %v2224_v24  ;;  %v154_v58 = vld [vmem:[%s3799_s1 + $0x220] sm:$0xff]  ;;  %v60_v60 = vld [vmem:[%s3798_s0 + $0x48] sm:$0xff]  ;;  %v172_v61 = vld [vmem:[%s3799_s1 + $0x2b0] sm:$0xff] }
  0x1e   :  { %2227 = vmatprep.subr.bf16.mxu0 %v2226_v26  ;;  %v173_v62 = vld [vmem:[%s3799_s1 + $0x2b8] sm:$0xff]  ;;  %v68_v0 = vld [vmem:[%s3798_s0 + $0x88] sm:$0xff]  ;;  %v2272_v1 = vpack.c.bf16 %v155_v59, %v154_v58  ;;  %v65_v2 = vld [vmem:[%s3798_s0 + $0x70] sm:$0xff] }
  0x1f   :  { %2257 = vmatpush3.bf16.msra.mxu1 %v2256_v25  ;;  %v66_v63 = vld [vmem:[%s3798_s0 + $0x78] sm:$0xff]  ;;  %v2274_v3 = vpack.c.bf16 %v173_v62, %v172_v61  ;;  %v156_v4 = vld [vmem:[%s3799_s1 + $0x230] sm:$0xff]  ;;  %v67_v6 = vld [vmem:[%s3798_s0 + $0x80] sm:$0xff] }
  0x20   :  { %2259 = vmatprep.subr.bf16.mxu1 %v2258_v30  ;;  %v157_v5 = vld [vmem:[%s3799_s1 + $0x238] sm:$0xff]  ;;  %v174_v7 = vld [vmem:[%s3799_s1 + $0x2c0] sm:$0xff]  ;;  %v175_v8 = vld [vmem:[%s3799_s1 + $0x2c8] sm:$0xff] }
  0x21   :  { %2229 = vmatpush3.bf16.msra.mxu0 %v2228_v34  ;;  %v73_v9 = vld [vmem:[%s3798_s0 + $0xb0] sm:$0xff]  ;;  %v75_v10 = vld [vmem:[%s3798_s0 + $0xc0] sm:$0xff]  ;;  %v2276_v11 = vpack.c.bf16 %v157_v5, %v156_v4  ;;  %v72_v12 = vld [vmem:[%s3798_s0 + $0xa8] sm:$0xff] }
  0x22   :  { %2263 = vmatprep.subr.bf16.mxu0 %v2262_v36 }
  0x23   :  { %2261 = vmatpush3.bf16.msra.mxu1 %v2260_v35 }
  0x24   :  { %2294 = vmatprep.subr.bf16.mxu1 %v2641_v52  ;;  %272 = vmatmul.mubr.f32.vlgmr.msra.gmra.mrb[0].mxu0 %v51_v43 }
  0x25   :  { %2265 = vmatpush3.bf16.msra.mxu0 %v2264_v44  ;;  %276 = vmatprep.mubr.f32.mxu0 %v59_v51 }
  0x26   :  { %362 = vmatmul.mubr.f32.vlgmr.msra.gmra.mrb[0].mxu1 %v53_v45  ;;  %2267 = vmatprep.subr.bf16.mxu0 %v2266_v46 }
  0x27   :  { %366 = vmatprep.mubr.f32.mxu1 %v61_v54  ;;  %2296 = vmatpush3.bf16.msra.mxu1 %v2295_v53 }
  0x28   :  { %277 = vmatmul.mubr.f32.gmra.mrb[2].mxu0 %v58_v56  ;;  %2297 = vmatprep.subr.bf16.mxu1 %v2641_v52 }
  0x29   :  { %2269 = vmatpush3.bf16.msra.mxu0 %v2268_v55  ;;  %281 = vmatprep.mubr.f32.mxu0 %v66_v63 }
  0x2a   :  { %367 = vmatmul.mubr.f32.gmra.mrb[2].mxu1 %v60_v60  ;;  %2271 = vmatprep.subr.bf16.mxu0 %v2270_v57 }
  0x2b   :  { %371 = vmatprep.mubr.f32.mxu1 %v68_v0 }
  0x2c   :  { %282 = vmatmul.mubr.f32.gmra.mrb[4].mxu0 %v65_v2 }
  0x2d   :  { %2273 = vmatpush3.bf16.msra.mxu0 %v2272_v1 }
  0x2e   :  { %372 = vmatmul.mubr.f32.gmra.mrb[4].mxu1 %v67_v6 }
  0x2f   :  { %20 = vsyncpa [#allocation3], 0  ;;  %2275 = vmatprep.subr.bf16.mxu0 %v2274_v3  ;;  %v2278_v13 = vpack.c.bf16 %v175_v8, %v174_v7  ;;  %v158_v14 = vld [vmem:[%s3799_s1 + $0x240] sm:$0xff]  ;;  %v159_v15 = vld [vmem:[%s3799_s1 + $0x248] sm:$0xff]  ;;  %286 = vmatprep.mubr.f32.mxu0 %v73_v9  ;;  %vm191_vm0 = vcmask 130048   ;;  %vm2642_vm1 = vmmov 0  }
  0x30   :  { %v74_v16 = vld [vmem:[%s3798_s0 + $0xb8] sm:$0xff]  ;;  %v176_v17 = vld [vmem:[%s3799_s1 + $0x2d0] sm:$0xff]  ;;  %376 = vmatprep.mubr.f32.mxu1 %v75_v10  ;;  %v80_v19 = vld [vmem:[%s3798_s0 + $0xe8] sm:$0xff]  ;;  %287 = vmatmul.mubr.f32.gmra.mrb[6].mxu0 %v72_v12  ;;  %v2280_v21 = vpack.c.bf16 %v159_v15, %v158_v14  ;;  %v2643_v37 = vmov 0.0  }
  0x31   :  { %v177_v18 = vld [vmem:[%s3799_s1 + $0x2d8] sm:$0xff]  ;;  %2277 = vmatpush3.bf16.msra.mxu0 %v2276_v11  ;;  %v79_v22 = vld [vmem:[%s3798_s0 + $0xe0] sm:$0xff]  ;;  %v160_v24 = vld [vmem:[%s3799_s1 + $0x250] sm:$0xff]  ;;  %291 = vmatprep.mubr.f32.mxu0 %v80_v19 }
  0x32   :  { %v82_v20 = vld [vmem:[%s3798_s0 + $0xf8] sm:$0xff]  ;;  %377 = vmatmul.mubr.f32.gmra.mrb[6].mxu1 %v74_v16  ;;  %2279 = vmatprep.subr.bf16.mxu0 %v2278_v13  ;;  %v2282_v23 = vpack.c.bf16 %v177_v18, %v176_v17  ;;  %v81_v26 = vld [vmem:[%s3798_s0 + $0xf0] sm:$0xff]  ;;  %v178_v27 = vld [vmem:[%s3799_s1 + $0x2e0] sm:$0xff] }
  0x33   :  { %v161_v25 = vld [vmem:[%s3799_s1 + $0x258] sm:$0xff]  ;;  %v179_v28 = vld [vmem:[%s3799_s1 + $0x2e8] sm:$0xff]  ;;  %381 = vmatprep.mubr.f32.mxu1 %v82_v20  ;;  %v162_v32 = vld [vmem:[%s3799_s1 + $0x260] sm:$0xff] }
  0x34   :  { %v56_v29 = vld [vmem:[%s3798_s0 + $0x28] sm:$0xff]  ;;  %292 = vmatmul.mubr.f32.gmra.mrb[8].mxu0 %v79_v22  ;;  %v2284_v30 = vpack.c.bf16 %v161_v25, %v160_v24  ;;  %v2286_v31 = vpack.c.bf16 %v179_v28, %v178_v27  ;;  %v57_v34 = vld [vmem:[%s3798_s0 + $0x30] sm:$0xff]  ;;  %v181_v36 = vld [vmem:[%s3799_s1 + $0x2f8] sm:$0xff] }
  0x35   :  { %2281 = vmatpush3.bf16.msra.mxu0 %v2280_v21  ;;  %v163_v33 = vld [vmem:[%s3799_s1 + $0x268] sm:$0xff]  ;;  %451 = vmatprep.mubr.f32.mxu0 %v56_v29  ;;  %v180_v35 = vld [vmem:[%s3799_s1 + $0x2f0] sm:$0xff]  ;;  %v165_v41 = vld [vmem:[%s3799_s1 + $0x278] sm:$0xff] }
  0x36   :  { %382 = vmatmul.mubr.f32.gmra.mrb[8].mxu1 %v81_v26  ;;  %2283 = vmatprep.subr.bf16.mxu0 %v2282_v23  ;;  %v2288_v38 = vpack.c.bf16 %v163_v33, %v162_v32  ;;  %v2290_v39 = vpack.c.bf16 %v181_v36, %v180_v35  ;;  %v164_v40 = vld [vmem:[%s3799_s1 + $0x270] sm:$0xff]  ;;  %v64_v42 = vld [vmem:[%s3798_s0 + $0x68] sm:$0xff]  ;;  %v71_v44 = vld [vmem:[%s3798_s0 + $0xa0] sm:$0xff] }
  0x37   :  { %2042 = vmatprep.mubr.msk.f32.mxu1 %vm2642_vm1, %v2643_v37  ;;  %v2292_v43 = vpack.c.bf16 %v165_v41, %v164_v40  ;;  %v55_v45 = vld [vmem:[%s3798_s0 + $0x20] sm:$0xff]  ;;  %v78_v47 = vld [vmem:[%s3798_s0 + $0xd8] sm:$0xff]  ;;  %v85_v50 = vld [vmem:[%s3798_s0 + $0x110] sm:$0xff] }
  0x38   :  { %v63_v46 = vld [vmem:[%s3798_s0 + $0x60] sm:$0xff]  ;;  %v62_v48 = vld [vmem:[%s3798_s0 + $0x58] sm:$0xff]  ;;  %v69_v51 = vld [vmem:[%s3798_s0 + $0x90] sm:$0xff] }
  0x39   :  { %2285 = vmatpush3.bf16.msra.mxu0 %v2284_v30  ;;  %v70_v49 = vld [vmem:[%s3798_s0 + $0x98] sm:$0xff]  ;;  %v77_v53 = vld [vmem:[%s3798_s0 + $0xd0] sm:$0xff]  ;;  %v76_v54 = vld [vmem:[%s3798_s0 + $0xc8] sm:$0xff] }
  0x3a   :  { %2043 = vmatmul.mubr.msk.f32.vlgmr.msra.gmra.mrb[10].mxu1 %vm191_vm0, %v57_v34  ;;  %2287 = vmatprep.subr.bf16.mxu0 %v2286_v31  ;;  %v84_v55 = vld [vmem:[%s3798_s0 + $0x108] sm:$0xff]  ;;  %v83_v56 = vld [vmem:[%s3798_s0 + $0x100] sm:$0xff]  ;;  %v638_v60 = vld [vmem:[%s3803_s5 + $0x10] sm:$0xff] }
  0x3b   :  { %2045 = vmatprep.mubr.msk.f32.mxu1 %vm2642_vm1, %v2643_v37  ;;  %v636_v57 = vld [vmem:[%s3803_s5] sm:$0xff]  ;;  %v637_v58 = vld [vmem:[%s3803_s5 + $0x8] sm:$0xff]  ;;  %v639_v61 = vld [vmem:[%s3803_s5 + $0x18] sm:$0xff] }
  0x3c   :  { %v2298_v59 = vpack.c.bf16 %v637_v58, %v636_v57  ;;  %v2301_v62 = vpack.c.bf16 %v639_v61, %v638_v60  ;;  %v640_v63 = vld [vmem:[%s3803_s5 + $0x20] sm:$0xff]  ;;  %v641_v0 = vld [vmem:[%s3803_s5 + $0x28] sm:$0xff]  ;;  %v642_v2 = vld [vmem:[%s3803_s5 + $0x30] sm:$0xff] }
  0x3d   :  { %2289 = vmatpush3.bf16.msra.mxu0 %v2288_v38  ;;  %v2304_v1 = vpack.c.bf16 %v641_v0, %v640_v63  ;;  %v643_v3 = vld [vmem:[%s3803_s5 + $0x38] sm:$0xff]  ;;  %v644_v5 = vld [vmem:[%s3803_s5 + $0x40] sm:$0xff]  ;;  %v645_v6 = vld [vmem:[%s3803_s5 + $0x48] sm:$0xff] }
  0x3e   :  { %2046 = vmatmul.mubr.msk.f32.gmra.mrb[12].mxu1 %vm191_vm0, %v64_v42  ;;  %2291 = vmatprep.subr.bf16.mxu0 %v2290_v39  ;;  %v2307_v4 = vpack.c.bf16 %v643_v3, %v642_v2  ;;  %v2310_v7 = vpack.c.bf16 %v645_v6, %v644_v5  ;;  %v646_v8 = vld [vmem:[%s3803_s5 + $0x50] sm:$0xff]  ;;  %v647_v9 = vld [vmem:[%s3803_s5 + $0x58] sm:$0xff]  ;;  %v648_v11 = vld [vmem:[%s3803_s5 + $0x60] sm:$0xff] }
  0x3f   :  { %2048 = vmatprep.mubr.msk.f32.mxu1 %vm2642_vm1, %v2643_v37  ;;  %2299 = vmatpush3.bf16.msra.mxu1 %v2298_v59  ;;  %v2313_v10 = vpack.c.bf16 %v647_v9, %v646_v8  ;;  %v649_v12 = vld [vmem:[%s3803_s5 + $0x68] sm:$0xff]  ;;  %v650_v14 = vld [vmem:[%s3803_s5 + $0x70] sm:$0xff]  ;;  %v651_v15 = vld [vmem:[%s3803_s5 + $0x78] sm:$0xff] }
  0x40   :  { %2300 = vmatprep.subr.bf16.mxu1 %v2641_v52  ;;  %v2316_v13 = vpack.c.bf16 %v649_v12, %v648_v11  ;;  %v2319_v16 = vpack.c.bf16 %v651_v15, %v650_v14  ;;  %v1778_v18 = vld [vmem:[%s3800_s2] ss:$0 sm:$0xff] }
  0x41   :  { %2293 = vmatpush3.bf16.msra.mxu0 %v2292_v43 }
  0x42   :  { %2049 = vmatmul.mubr.msk.f32.gmra.mrb[14].mxu1 %vm191_vm0, %v71_v44  ;;  %2321 = vmatprep.subr.bf16.mxu0 %v2641_v52 }
  0x43   :  { %2051 = vmatprep.mubr.msk.f32.mxu1 %vm2642_vm1, %v2643_v37  ;;  %2302 = vmatpush3.bf16.msra.mxu1 %v2301_v62 }
  0x44   :  { %452 = vmatmul.mubr.f32.vlgmr.msra.gmra.mrb[10].mxu0 %v55_v45  ;;  %2303 = vmatprep.subr.bf16.mxu1 %v2641_v52 }
  0x45   :  { %456 = vmatprep.mubr.f32.mxu0 %v63_v46 }
  0x46   :  { %2052 = vmatmul.mubr.msk.f32.gmra.mrb[16].mxu1 %vm191_vm0, %v78_v47 }
  0x47   :  { %2054 = vmatprep.mubr.msk.f32.mxu1 %vm2642_vm1, %v2643_v37  ;;  %2305 = vmatpush3.bf16.msra.mxu1 %v2304_v1 }
  0x48   :  { %457 = vmatmul.mubr.f32.gmra.mrb[12].mxu0 %v62_v48  ;;  %2306 = vmatprep.subr.bf16.mxu1 %v2641_v52 }
  0x49   :  { %461 = vmatprep.mubr.f32.mxu0 %v70_v49 }
  0x4a   :  { %2055 = vmatmul.mubr.msk.f32.gmra.mrb[18].mxu1 %vm191_vm0, %v85_v50 }
  0x4b   :  { %2089 = vmatprep.mubr.msk.f32.mxu1 %vm2642_vm1, %v2643_v37  ;;  %2308 = vmatpush3.bf16.msra.mxu1 %v2307_v4 }
  0x4c   :  { %462 = vmatmul.mubr.f32.gmra.mrb[14].mxu0 %v69_v51  ;;  %2309 = vmatprep.subr.bf16.mxu1 %v2641_v52 }
  0x4d   :  { %466 = vmatprep.mubr.f32.mxu0 %v77_v53 }
  0x4f   :  { %2311 = vmatpush3.bf16.msra.mxu1 %v2310_v7 }
  0x50   :  { %467 = vmatmul.mubr.f32.gmra.mrb[16].mxu0 %v76_v54  ;;  %2312 = vmatprep.subr.bf16.mxu1 %v2641_v52 }
  0x51   :  { %471 = vmatprep.mubr.f32.mxu0 %v84_v55 }
  0x53   :  { %2314 = vmatpush3.bf16.msra.mxu1 %v2313_v10 }
  0x54   :  { %472 = vmatmul.mubr.f32.gmra.mrb[18].mxu0 %v83_v56  ;;  %2315 = vmatprep.subr.bf16.mxu1 %v2641_v52 }
  0x55   :  { %2136 = vmatprep.mubr.msk.f32.mxu0 %vm2642_vm1, %v2643_v37 }
  0x57   :  { %2317 = vmatpush3.bf16.msra.mxu1 %v2316_v13 }
  0x58   :  { %2318 = vmatprep.subr.bf16.mxu1 %v2641_v52 }
  0x5b   :  { %2320 = vmatpush3.bf16.msra.mxu1 %v2319_v16 }
  0xf7   :  { %v1859_v17 = vpop.f32.mrb[0].mxu0 }
  0xf8   :  { %v1860_v19 = vpop.f32.mrb[1].mxu0 }
  0xf9   :  { %v1906_v20 = vpop.f32.mrb[0].mxu1  ;;  %v1861_v21 = vadd.f32 %v1860_v19, %v1859_v17 }
  0xfa   :  { %v1907_v22 = vpop.f32.mrb[1].mxu1 }
  0xfb   :  { %v1908_v23 = vadd.f32 %v1907_v22, %v1906_v20  ;;  %v274_v24 = vadd.f32 %v1861_v21, %v1778_v18  ;;  %v1862_v25 = vpop.f32.mrb[2].mxu0 }
  0xfc   :  { %v1863_v26 = vpop.f32.mrb[3].mxu0 }
  0xfd   :  { %v1909_v27 = vpop.f32.mrb[2].mxu1  ;;  %v364_v28 = vadd.f32 %v1908_v23, %v274_v24  ;;  %v1864_v29 = vadd.f32 %v1863_v26, %v1862_v25 }
  0xfe   :  { %v1910_v30 = vpop.f32.mrb[3].mxu1 }
  0xff   :  { %v1911_v31 = vadd.f32 %v1910_v30, %v1909_v27  ;;  %v279_v32 = vadd.f32 %v1864_v29, %v1778_v18  ;;  %v1865_v33 = vpop.f32.mrb[4].mxu0 }
 0x100   :  { %v1866_v34 = vpop.f32.mrb[5].mxu0 }
 0x101   :  { %v1912_v35 = vpop.f32.mrb[4].mxu1  ;;  %v369_v36 = vadd.f32 %v1911_v31, %v279_v32  ;;  %v1867_v38 = vadd.f32 %v1866_v34, %v1865_v33 }
 0x102   :  { %v1913_v39 = vpop.f32.mrb[5].mxu1 }
 0x103   :  { %v1914_v40 = vadd.f32 %v1913_v39, %v1912_v35  ;;  %v284_v41 = vadd.f32 %v1867_v38, %v1778_v18  ;;  %v1868_v42 = vpop.f32.mrb[6].mxu0 }
 0x104   :  { %v1869_v43 = vpop.f32.mrb[7].mxu0 }
 0x105   :  { %v1915_v44 = vpop.f32.mrb[6].mxu1  ;;  %v374_v45 = vadd.f32 %v1914_v40, %v284_v41  ;;  %v1870_v46 = vadd.f32 %v1869_v43, %v1868_v42 }
 0x106   :  { %v1916_v47 = vpop.f32.mrb[7].mxu1 }
 0x107   :  { %v1917_v48 = vadd.f32 %v1916_v47, %v1915_v44  ;;  %v289_v49 = vadd.f32 %v1870_v46, %v1778_v18  ;;  %v1871_v50 = vpop.f32.mrb[8].mxu0 }
 0x108   :  { %v1872_v51 = vpop.f32.mrb[9].mxu0 }
 0x109   :  { %v1918_v53 = vpop.f32.mrb[8].mxu1  ;;  %v379_v54 = vadd.f32 %v1917_v48, %v289_v49  ;;  %v1873_v55 = vadd.f32 %v1872_v51, %v1871_v50 }
 0x10a   :  { %v1919_v56 = vpop.f32.mrb[9].mxu1 }
 0x10b   :  { %v1920_v57 = vadd.f32 %v1919_v56, %v1918_v53  ;;  %v294_v58 = vadd.f32 %v1873_v55, %v1778_v18 }
 0x10d   :  { %v543_v59 = vpop.f32.mrb[10].mxu1  ;;  %v384_v60 = vadd.f32 %v1920_v57, %v294_v58 }
 0x10e   :  { %v2044_v61 = vpop.f32.mrb[11].mxu1 }
 0x111   :  { %v548_v62 = vpop.f32.mrb[12].mxu1 }
 0x112   :  { %v2047_v63 = vpop.f32.mrb[13].mxu1 }
 0x115   :  { %v553_v0 = vpop.f32.mrb[14].mxu1 }
 0x116   :  { %v2050_v1 = vpop.f32.mrb[15].mxu1 }
 0x117   :  { %v1953_v2 = vpop.f32.mrb[10].mxu0 }
 0x118   :  { %v1954_v3 = vpop.f32.mrb[11].mxu0 }
 0x119   :  { %v558_v4 = vpop.f32.mrb[16].mxu1  ;;  %v1955_v5 = vadd.f32 %v1954_v3, %v1953_v2 }
 0x11a   :  { %v2053_v6 = vpop.f32.mrb[17].mxu1 }
 0x11b   :  { %v1956_v7 = vpop.f32.mrb[12].mxu0  ;;  %v454_v8 = vadd.f32 %v1955_v5, %v364_v28 }
 0x11c   :  { %v1957_v9 = vpop.f32.mrb[13].mxu0 }
 0x11d   :  { %v563_v10 = vpop.f32.mrb[18].mxu1  ;;  %v544_v11 = vadd.f32 %v543_v59, %v454_v8  ;;  %v1958_v12 = vadd.f32 %v1957_v9, %v1956_v7  ;;  %v1784_v8 = vld [vmem:[%s3801_s3] ss:$0 sm:$0xff] }
 0x11e   :  { %v2056_v13 = vpop.f32.mrb[19].mxu1 }
 0x11f   :  { %v1959_v14 = vpop.f32.mrb[14].mxu0  ;;  %v459_v15 = vadd.f32 %v1958_v12, %v369_v36  ;;  %v567_v19 = vmax.f32 %v544_v11, 0.0  ;;  %v1785_v13 = vld [vmem:[%s3802_s4] ss:$0 sm:$0xff] }
 0x120   :  { %v1960_v16 = vpop.f32.mrb[15].mxu0 }
 0x121   :  { %v549_v17 = vadd.f32 %v548_v62, %v459_v15  ;;  %v1961_v18 = vadd.f32 %v1960_v16, %v1959_v14 }
 0x123   :  { %v568_v20 = vmax.f32 %v549_v17, 0.0  ;;  %v1962_v21 = vpop.f32.mrb[16].mxu0  ;;  %v464_v22 = vadd.f32 %v1961_v18, %v374_v45 }
 0x124   :  { %v1963_v23 = vpop.f32.mrb[17].mxu0 }
 0x125   :  { %v574_v24 = vadd.f32 %v568_v20, %v567_v19  ;;  %v554_v25 = vadd.f32 %v553_v0, %v464_v22  ;;  %v1964_v26 = vadd.f32 %v1963_v23, %v1962_v21 }
 0x127   :  { %v569_v27 = vmax.f32 %v554_v25, 0.0  ;;  %v1965_v28 = vpop.f32.mrb[18].mxu0  ;;  %v469_v29 = vadd.f32 %v1964_v26, %v379_v54  ;;  %v812_v25 = vld [vmem:[%s3807_s9] sm:$0xff]  ;;  %v813_v26 = vld [vmem:[%s3807_s9 + $0x8] sm:$0xff] }
 0x128   :  { %v1966_v30 = vpop.f32.mrb[19].mxu0 }
 0x129   :  { %v575_v31 = vadd.f32 %v574_v24, %v569_v27  ;;  %v559_v32 = vadd.f32 %v558_v4, %v469_v29  ;;  %v1967_v33 = vadd.f32 %v1966_v30, %v1965_v28  ;;  %v814_v28 = vld [vmem:[%s3807_s9 + $0x10] sm:$0xff]  ;;  %v815_v29 = vld [vmem:[%s3807_s9 + $0x18] sm:$0xff] }
 0x12a   :  { %v2325_v30 = vpack.c.bf16 %v815_v29, %v814_v28 }
 0x12b   :  { %v570_v34 = vmax.f32 %v559_v32, 0.0  ;;  %v474_v35 = vadd.f32 %v1967_v33, %v384_v60  ;;  %v817_v32 = vld [vmem:[%s3807_s9 + $0x28] sm:$0xff] }
 0x12d   :  { %v576_v36 = vadd.f32 %v575_v31, %v570_v34  ;;  %v564_v38 = vadd.f32 %v563_v10, %v474_v35  ;;  %v816_v31 = vld [vmem:[%s3807_s9 + $0x20] sm:$0xff]  ;;  %v819_v35 = vld [vmem:[%s3807_s9 + $0x38] sm:$0xff] }
 0x12e   :  { %v2328_v33 = vpack.c.bf16 %v817_v32, %v816_v31 }
 0x12f   :  { %v571_v39 = vmax.f32 %v564_v38, 0.0  ;;  %v820_v38 = vld [vmem:[%s3807_s9 + $0x40] sm:$0xff] }
 0x131   :  { %v577_v40 = vadd.f32 %v576_v36, %v571_v39 }
 0x133   :  { %v578_v41 = vrot.slane %v577_v40, 4 }
 0x135   :  { %v579_v42 = vadd.f32 %v578_v41, %v577_v40  ;;  %v822_v41 = vld [vmem:[%s3807_s9 + $0x50] sm:$0xff] }
 0x137   :  { %v580_v43 = vrot.slane %v579_v42, 2 }
 0x139   :  { %v581_v44 = vadd.f32 %v580_v43, %v579_v42  ;;  %v823_v42 = vld [vmem:[%s3807_s9 + $0x58] sm:$0xff] }
 0x13a   :  { %v2337_v43 = vpack.c.bf16 %v823_v42, %v822_v41 }
 0x13b   :  { %v582_v45 = vrot.slane %v581_v44, 1 }
 0x13d   :  { %v583_v46 = vadd.f32 %v582_v45, %v581_v44  ;;  %v824_v44 = vld [vmem:[%s3807_s9 + $0x60] sm:$0xff]  ;;  %v825_v45 = vld [vmem:[%s3807_s9 + $0x68] sm:$0xff] }
 0x13f   :  { %v585_v47 = vmul.f32 0.025, %v583_v46  ;;  %v2340_v46 = vpack.c.bf16 %v825_v45, %v824_v44 }
 0x141   :  { %v586_v48 = vsub.f32 %v567_v19, %v585_v47  ;;  %v587_v49 = vsub.f32 %v568_v20, %v585_v47  ;;  %v588_v50 = vsub.f32 %v569_v27, %v585_v47  ;;  %v589_v51 = vsub.f32 %v570_v34, %v585_v47  ;;  %v818_v34 = vld [vmem:[%s3807_s9 + $0x30] sm:$0xff] }
 0x142   :  { %v590_v53 = vsub.f32 %v571_v39, %v585_v47  ;;  %v2322_v27 = vpack.c.bf16 %v813_v26, %v812_v25  ;;  %v2331_v36 = vpack.c.bf16 %v819_v35, %v818_v34  ;;  %v821_v39 = vld [vmem:[%s3807_s9 + $0x48] sm:$0xff]  ;;  %v826_v47 = vld [vmem:[%s3807_s9 + $0x70] sm:$0xff] }
 0x143   :  { %v591_v54 = vmul.f32 %v586_v48, %v586_v48  ;;  %v592_v55 = vmul.f32 %v587_v49, %v587_v49  ;;  %v593_v56 = vmul.f32 %v588_v50, %v588_v50  ;;  %v594_v58 = vmul.f32 %v589_v51, %v589_v51 }
 0x144   :  { %v595_v60 = vmul.f32 %v590_v53, %v590_v53  ;;  %2323 = vmatpush3.bf16.msra.mxu0 %v2322_v27  ;;  %v2334_v40 = vpack.c.bf16 %v821_v39, %v820_v38  ;;  %v1787_v38 = vld [vmem:[%s3805_s7] ss:$0 sm:$0xff] }
 0x145   :  { %v596_v57 = vadd.f32 %v592_v55, %v591_v54  ;;  %2324 = vmatprep.subr.bf16.mxu0 %v2641_v52 }
 0x147   :  { %v597_v59 = vadd.f32 %v596_v57, %v593_v56 }
 0x148   :  { %2326 = vmatpush3.bf16.msra.mxu0 %v2325_v30 }
 0x149   :  { %v598_v61 = vadd.f32 %v597_v59, %v594_v58  ;;  %2327 = vmatprep.subr.bf16.mxu0 %v2641_v52 }
 0x14b   :  { %v599_v62 = vadd.f32 %v598_v61, %v595_v60 }
 0x14c   :  { %2329 = vmatpush3.bf16.msra.mxu0 %v2328_v33 }
 0x14d   :  { %v600_v63 = vrot.slane %v599_v62, 4  ;;  %2330 = vmatprep.subr.bf16.mxu0 %v2641_v52 }
 0x14f   :  { %v601_v0 = vadd.f32 %v600_v63, %v599_v62 }
 0x150   :  { %2332 = vmatpush3.bf16.msra.mxu0 %v2331_v36 }
 0x151   :  { %v602_v1 = vrot.slane %v601_v0, 2  ;;  %2333 = vmatprep.subr.bf16.mxu0 %v2641_v52 }
 0x153   :  { %v603_v2 = vadd.f32 %v602_v1, %v601_v0 }
 0x154   :  { %2335 = vmatpush3.bf16.msra.mxu0 %v2334_v40 }
 0x155   :  { %v604_v3 = vrot.slane %v603_v2, 1  ;;  %2336 = vmatprep.subr.bf16.mxu0 %v2641_v52 }
 0x157   :  { %v605_v4 = vadd.f32 %v604_v3, %v603_v2 }
 0x158   :  { %2338 = vmatpush3.bf16.msra.mxu0 %v2337_v43  ;;  %v1788_v43 = vld [vmem:[%s3806_s8] ss:$0 sm:$0xff] }
 0x159   :  { %v606_v5 = vmul.f32 0.025, %v605_v4  ;;  %2339 = vmatprep.subr.bf16.mxu0 %v2641_v52 }
 0x15b   :  { %v607_v6 = vadd.f32 1e-05, %v606_v5 }
 0x15c   :  { %2341 = vmatpush3.bf16.msra.mxu0 %v2340_v46 }
 0x15d   :  { %2471 = vrsqrt.f32 %v607_v6  ;;  %2342 = vmatprep.subr.bf16.mxu0 %v2641_v52 }
 0x167   :  { %v2472_v7 = vpop.eup %2471 }
 0x168   :  { %v613_v9 = vmul.f32 %v2472_v7, %v590_v53  ;;  %v609_v10 = vmul.f32 %v2472_v7, %v586_v48  ;;  %v610_v11 = vmul.f32 %v2472_v7, %v587_v49  ;;  %v611_v12 = vmul.f32 %v2472_v7, %v588_v50  ;;  %v827_v48 = vld [vmem:[%s3807_s9 + $0x78] sm:$0xff]  ;;  %v1786_v53 = vld [vmem:[%s3804_s6] ss:$0 sm:$0xff] }
 0x169   :  { %v612_v14 = vmul.f32 %v2472_v7, %v589_v51  ;;  %v2343_v49 = vpack.c.bf16 %v827_v48, %v826_v47 }
 0x16a   :  { %v620_v15 = vmul.f32 %v1784_v8, %v609_v10  ;;  %v621_v17 = vmul.f32 %v1784_v8, %v610_v11  ;;  %v622_v19 = vmul.f32 %v1784_v8, %v611_v12  ;;  %v624_v23 = vmul.f32 %v1784_v8, %v613_v9 }
 0x16b   :  { %v623_v21 = vmul.f32 %v1784_v8, %v612_v14  ;;  %2344 = vmatpush3.bf16.msra.mxu0 %v2343_v49 }
 0x16c   :  { %v631_v16 = vadd.f32 %v1785_v13, %v620_v15  ;;  %v632_v18 = vadd.f32 %v1785_v13, %v621_v17  ;;  %v633_v20 = vadd.f32 %v1785_v13, %v622_v19  ;;  %v635_v24 = vadd.f32 %v1785_v13, %v624_v23 }
 0x16d   :  { %v634_v22 = vadd.f32 %v1785_v13, %v623_v21 }
 0x16e   :  { %2090 = vmatmul.mubr.f32.vlgmr.msra.gmra.mrb[20].mxu1 %v631_v16 }
 0x16f   :  { %2092 = vmatprep.mubr.msk.f32.mxu1 %vm2642_vm1, %v2643_v37 }
 0x172   :  { %2093 = vmatmul.mubr.f32.gmra.mrb[22].mxu1 %v632_v18 }
 0x173   :  { %2095 = vmatprep.mubr.msk.f32.mxu1 %vm2642_vm1, %v2643_v37 }
 0x176   :  { %2096 = vmatmul.mubr.f32.gmra.mrb[24].mxu1 %v633_v20 }
 0x177   :  { %2098 = vmatprep.mubr.msk.f32.mxu1 %vm2642_vm1, %v2643_v37 }
 0x17a   :  { %2099 = vmatmul.mubr.f32.gmra.mrb[26].mxu1 %v634_v22 }
 0x17b   :  { %2101 = vmatprep.mubr.msk.f32.mxu1 %vm2642_vm1, %v2643_v37 }
 0x17e   :  { %2102 = vmatmul.mubr.f32.gmra.mrb[28].mxu1 %v635_v24 }
 0x17f   :  { %1206 = vmatprep.mubr.f32.mxu1 %v2643_v37 }
 0x241   :  { %v725_v50 = vpop.f32.mrb[20].mxu1 }
 0x242   :  { %v2091_v51 = vpop.f32.mrb[21].mxu1  ;;  %v726_v55 = vadd.f32 %v1786_v53, %v725_v50 }
 0x245   :  { %v730_v54 = vpop.f32.mrb[22].mxu1 }
 0x246   :  { %v731_v56 = vadd.f32 %v1786_v53, %v730_v54  ;;  %v2094_v57 = vpop.f32.mrb[23].mxu1 }
 0x247   :  { %v1001_v57 = vld [vmem:[%s3811_s13 + $0x40] sm:$0xff] }
 0x248   :  { %v751_v58 = vadd.f32 %v731_v56, %v726_v55 }
 0x249   :  { %v735_v59 = vpop.f32.mrb[24].mxu1 }
 0x24a   :  { %v736_v60 = vadd.f32 %v1786_v53, %v735_v59  ;;  %v2097_v61 = vpop.f32.mrb[25].mxu1 }
 0x24b   :  { %v993_v61 = vld [vmem:[%s3811_s13] sm:$0xff] }
 0x24c   :  { %v752_v62 = vadd.f32 %v751_v58, %v736_v60  ;;  %v996_v58 = vld [vmem:[%s3811_s13 + $0x18] sm:$0xff] }
 0x24d   :  { %v740_v63 = vpop.f32.mrb[26].mxu1 }
 0x24e   :  { %v741_v0 = vadd.f32 %v1786_v53, %v740_v63  ;;  %v2100_v1 = vpop.f32.mrb[27].mxu1 }
 0x24f   :  { %v995_v1 = vld [vmem:[%s3811_s13 + $0x10] sm:$0xff] }
 0x250   :  { %v753_v2 = vadd.f32 %v752_v62, %v741_v0  ;;  %v1000_v62 = vld [vmem:[%s3811_s13 + $0x38] sm:$0xff] }
 0x251   :  { %v745_v3 = vpop.f32.mrb[28].mxu1 }
 0x252   :  { %v746_v4 = vadd.f32 %v1786_v53, %v745_v3  ;;  %v2103_v5 = vpop.f32.mrb[29].mxu1 }
 0x253   :  { %v1015_v5 = vld [vmem:[%s3811_s13 + $0xb0] sm:$0xff] }
 0x254   :  { %v754_v6 = vadd.f32 %v753_v2, %v746_v4  ;;  %v1002_v2 = vld [vmem:[%s3811_s13 + $0x48] sm:$0xff] }
 0x255   :  { %v2379_v3 = vpack.c.bf16 %v1002_v2, %v995_v1  ;;  %v1078_v2 = vld [vmem:[%s3811_s13 + $0x2a8] sm:$0xff] }
 0x256   :  { %v755_v7 = vrot.slane %v754_v6, 4 }
 0x258   :  { %v756_v8 = vadd.f32 %v755_v7, %v754_v6  ;;  %v1010_v6 = vld [vmem:[%s3811_s13 + $0x88] sm:$0xff] }
 0x25a   :  { %v757_v9 = vrot.slane %v756_v8, 2 }
 0x25c   :  { %v758_v10 = vadd.f32 %v757_v9, %v756_v8  ;;  %v1017_v8 = vld [vmem:[%s3811_s13 + $0xc0] sm:$0xff]  ;;  %v1007_v9 = vld [vmem:[%s3811_s13 + $0x70] sm:$0xff] }
 0x25e   :  { %v759_v11 = vrot.slane %v758_v10, 1 }
 0x260   :  { %v760_v12 = vadd.f32 %v759_v11, %v758_v10  ;;  %v1014_v10 = vld [vmem:[%s3811_s13 + $0xa8] sm:$0xff]  ;;  %v2381_v11 = vpack.c.bf16 %v1017_v8, %v1010_v6  ;;  %v1087_v6 = vld [vmem:[%s3811_s13 + $0x2f0] sm:$0xff]  ;;  %v1084_v8 = vld [vmem:[%s3811_s13 + $0x2d8] sm:$0xff] }
 0x262   :  { %v761_v13 = vmul.f32 0.025, %v760_v12  ;;  %v2351_v12 = vpack.c.bf16 %v1014_v10, %v1007_v9 }
 0x264   :  { %v762_v14 = vsub.f32 %v726_v55, %v761_v13  ;;  %v763_v15 = vsub.f32 %v731_v56, %v761_v13  ;;  %v764_v16 = vsub.f32 %v736_v60, %v761_v13  ;;  %v765_v17 = vsub.f32 %v741_v0, %v761_v13  ;;  %v994_v56 = vld [vmem:[%s3811_s13 + $0x8] sm:$0xff]  ;;  %v1003_v60 = vld [vmem:[%s3811_s13 + $0x50] sm:$0xff] }
 0x265   :  { %v766_v18 = vsub.f32 %v746_v4, %v761_v13  ;;  %v2345_v59 = vpack.c.bf16 %v1001_v57, %v994_v56  ;;  %v2377_v63 = vpack.c.bf16 %v1003_v60, %v996_v58  ;;  %v2347_v0 = vpack.c.bf16 %v1000_v62, %v993_v61  ;;  %v1008_v4 = vld [vmem:[%s3811_s13 + $0x78] sm:$0xff]  ;;  %v1009_v13 = vld [vmem:[%s3811_s13 + $0x80] sm:$0xff]  ;;  %v1066_v56 = vld [vmem:[%s3811_s13 + $0x248] sm:$0xff] }
 0x266   :  { %v767_v19 = vmul.f32 %v762_v14, %v762_v14  ;;  %v768_v20 = vmul.f32 %v763_v15, %v763_v15  ;;  %v769_v21 = vmul.f32 %v764_v16, %v764_v16  ;;  %v770_v23 = vmul.f32 %v765_v17, %v765_v17  ;;  %v1073_v58 = vld [vmem:[%s3811_s13 + $0x280] sm:$0xff]  ;;  %v1070_v60 = vld [vmem:[%s3811_s13 + $0x268] sm:$0xff] }
 0x267   :  { %v771_v25 = vmul.f32 %v766_v18, %v766_v18  ;;  %2346 = vmatprep.subr.bf16.mxu1 %v2345_v59  ;;  %2378 = vmatprep.subr.bf16.mxu0 %v2377_v63  ;;  %v2349_v7 = vpack.c.bf16 %v1015_v5, %v1008_v4  ;;  %v1063_v59 = vld [vmem:[%s3811_s13 + $0x230] sm:$0xff]  ;;  %v2397_v61 = vpack.c.bf16 %v1073_v58, %v1066_v56  ;;  %v1065_v63 = vld [vmem:[%s3811_s13 + $0x240] sm:$0xff]  ;;  %v1080_v4 = vld [vmem:[%s3811_s13 + $0x2b8] sm:$0xff] }
 0x268   :  { %v772_v22 = vadd.f32 %v768_v20, %v767_v19  ;;  %2348 = vmatpush1.bf16.msra.mxu1 %v2347_v0  ;;  %v1031_v20 = vld [vmem:[%s3811_s13 + $0x130] sm:$0xff]  ;;  %v2367_v62 = vpack.c.bf16 %v1070_v60, %v1063_v59  ;;  %v1072_v0 = vld [vmem:[%s3811_s13 + $0x278] sm:$0xff]  ;;  %v2401_v9 = vpack.c.bf16 %v1087_v6, %v1080_v4 }
 0x269   :  { %2350 = vmatprep.subr.bf16.mxu1 %v2349_v7  ;;  %v2399_v1 = vpack.c.bf16 %v1072_v0, %v1065_v63  ;;  %v1077_v7 = vld [vmem:[%s3811_s13 + $0x2a0] sm:$0xff] }
 0x26a   :  { %v773_v24 = vadd.f32 %v772_v22, %v769_v21  ;;  %v1021_v21 = vld [vmem:[%s3811_s13 + $0xe0] sm:$0xff]  ;;  %v1028_v22 = vld [vmem:[%s3811_s13 + $0x118] sm:$0xff]  ;;  %v2371_v10 = vpack.c.bf16 %v1084_v8, %v1077_v7 }
 0x26c   :  { %v774_v26 = vadd.f32 %v773_v24, %v770_v23  ;;  %2352 = vmatpush1.bf16.msra.mxu1 %v2351_v12  ;;  %v2355_v24 = vpack.c.bf16 %v1028_v22, %v1021_v21  ;;  %v1086_v12 = vld [vmem:[%s3811_s13 + $0x2e8] sm:$0xff] }
 0x26e   :  { %v775_v27 = vadd.f32 %v774_v26, %v771_v25  ;;  %v1023_v25 = vld [vmem:[%s3811_s13 + $0xf0] sm:$0xff]  ;;  %v1030_v26 = vld [vmem:[%s3811_s13 + $0x128] sm:$0xff] }
 0x270   :  { %v776_v28 = vrot.slane %v775_v27, 4 }
 0x272   :  { %v777_v29 = vadd.f32 %v776_v28, %v775_v27  ;;  %v2387_v27 = vpack.c.bf16 %v1030_v26, %v1023_v25  ;;  %v1036_v28 = vld [vmem:[%s3811_s13 + $0x158] sm:$0xff]  ;;  %v998_v26 = vld [vmem:[%s3811_s13 + $0x28] sm:$0xff] }
 0x274   :  { %v778_v30 = vrot.slane %v777_v29, 2 }
 0x276   :  { %v779_v31 = vadd.f32 %v778_v30, %v777_v29  ;;  %v1043_v29 = vld [vmem:[%s3811_s13 + $0x190] sm:$0xff]  ;;  %v1038_v30 = vld [vmem:[%s3811_s13 + $0x168] sm:$0xff] }
 0x278   :  { %v780_v32 = vrot.slane %v779_v31, 1 }
 0x27a   :  { %v781_v33 = vadd.f32 %v780_v32, %v779_v31  ;;  %v2357_v31 = vpack.c.bf16 %v1043_v29, %v1036_v28  ;;  %v1045_v32 = vld [vmem:[%s3811_s13 + $0x1a0] sm:$0xff] }
 0x27b   :  { %v1789_v29 = vld [vmem:[%s3808_s10] ss:$0 sm:$0xff] }
 0x27c   :  { %v782_v34 = vmul.f32 0.025, %v781_v33  ;;  %v1035_v33 = vld [vmem:[%s3811_s13 + $0x150] sm:$0xff] }
 0x27e   :  { %v783_v35 = vadd.f32 1e-05, %v782_v34  ;;  %v1042_v34 = vld [vmem:[%s3811_s13 + $0x188] sm:$0xff] }
 0x280   :  { %2473 = vrsqrt.f32 %v783_v35  ;;  %v2389_v35 = vpack.c.bf16 %v1045_v32, %v1038_v30 }
 0x28a   :  { %v2474_v36 = vpop.eup %2473 }
 0x28b   :  { %v789_v39 = vmul.f32 %v2474_v36, %v766_v18  ;;  %v785_v40 = vmul.f32 %v2474_v36, %v762_v14  ;;  %v786_v41 = vmul.f32 %v2474_v36, %v763_v15  ;;  %v787_v42 = vmul.f32 %v2474_v36, %v764_v16  ;;  %v1016_v14 = vld [vmem:[%s3811_s13 + $0xb8] sm:$0xff]  ;;  %v1022_v16 = vld [vmem:[%s3811_s13 + $0xe8] sm:$0xff] }
 0x28c   :  { %v788_v44 = vmul.f32 %v2474_v36, %v765_v17  ;;  %v2383_v15 = vpack.c.bf16 %v1016_v14, %v1009_v13  ;;  %v1029_v17 = vld [vmem:[%s3811_s13 + $0x120] sm:$0xff]  ;;  %v1024_v18 = vld [vmem:[%s3811_s13 + $0xf8] sm:$0xff]  ;;  %v2359_v36 = vpack.c.bf16 %v1042_v34, %v1035_v33 }
 0x28d   :  { %v796_v45 = vmul.f32 %v1787_v38, %v785_v40  ;;  %v797_v47 = vmul.f32 %v1787_v38, %v786_v41  ;;  %v798_v49 = vmul.f32 %v1787_v38, %v787_v42  ;;  %v800_v54 = vmul.f32 %v1787_v38, %v789_v39  ;;  %v1044_v39 = vld [vmem:[%s3811_s13 + $0x198] sm:$0xff]  ;;  %v1050_v41 = vld [vmem:[%s3811_s13 + $0x1c8] sm:$0xff]  ;;  %v1057_v42 = vld [vmem:[%s3811_s13 + $0x200] sm:$0xff] }
 0x28e   :  { %v799_v51 = vmul.f32 %v1787_v38, %v788_v44  ;;  %v2353_v19 = vpack.c.bf16 %v1029_v17, %v1022_v16  ;;  %v2385_v23 = vpack.c.bf16 %v1031_v20, %v1024_v18  ;;  %v1037_v38 = vld [vmem:[%s3811_s13 + $0x160] sm:$0xff]  ;;  %v2361_v44 = vpack.c.bf16 %v1057_v42, %v1050_v41  ;;  %v1092_v14 = vld [vmem:[%s3811_s13 + $0x318] sm:$0xff]  ;;  %v1094_v16 = vld [vmem:[%s3811_s13 + $0x328] sm:$0xff] }
 0x28f   :  { %v807_v46 = vadd.f32 %v1788_v43, %v796_v45  ;;  %v808_v48 = vadd.f32 %v1788_v43, %v797_v47  ;;  %v809_v50 = vadd.f32 %v1788_v43, %v798_v49  ;;  %v811_v55 = vadd.f32 %v1788_v43, %v800_v54  ;;  %v1059_v45 = vld [vmem:[%s3811_s13 + $0x210] sm:$0xff]  ;;  %v1056_v47 = vld [vmem:[%s3811_s13 + $0x1f8] sm:$0xff]  ;;  %v1101_v18 = vld [vmem:[%s3811_s13 + $0x360] sm:$0xff] }
 0x290   :  { %v810_v53 = vadd.f32 %v1788_v43, %v799_v51  ;;  %2354 = vmatprep.subr.bf16.mxu1 %v2353_v19  ;;  %v2391_v40 = vpack.c.bf16 %v1044_v39, %v1037_v38  ;;  %v1052_v43 = vld [vmem:[%s3811_s13 + $0x1d8] sm:$0xff]  ;;  %v1058_v51 = vld [vmem:[%s3811_s13 + $0x208] sm:$0xff]  ;;  %v1091_v19 = vld [vmem:[%s3811_s13 + $0x310] sm:$0xff]  ;;  %v2405_v21 = vpack.c.bf16 %v1101_v18, %v1094_v16 }
 0x291   :  { %2137 = vmatmul.mubr.f32.vlgmr.msra.gmra.mrb[20].mxu0 %v807_v46  ;;  %2356 = vmatpush1.bf16.msra.mxu1 %v2355_v24  ;;  %v1049_v46 = vld [vmem:[%s3811_s13 + $0x1c0] sm:$0xff]  ;;  %v1064_v54 = vld [vmem:[%s3811_s13 + $0x238] sm:$0xff]  ;;  %v1098_v20 = vld [vmem:[%s3811_s13 + $0x348] sm:$0xff] }
 0x292   :  { %2139 = vmatprep.mubr.msk.f32.mxu0 %vm2642_vm1, %v2643_v37  ;;  %2380 = vmatpush1.bf16.msra.mxu0 %v2379_v3  ;;  %v2363_v49 = vpack.c.bf16 %v1056_v47, %v1049_v46  ;;  %v1085_v3 = vld [vmem:[%s3811_s13 + $0x2e0] sm:$0xff]  ;;  %v2375_v22 = vpack.c.bf16 %v1098_v20, %v1091_v19  ;;  %v1100_v24 = vld [vmem:[%s3811_s13 + $0x358] sm:$0xff] }
 0x293   :  { %2382 = vmatprep.subr.bf16.mxu0 %v2381_v11  ;;  %2358 = vmatprep.subr.bf16.mxu1 %v2357_v31  ;;  %v2369_v5 = vpack.c.bf16 %v1085_v3, %v1078_v2  ;;  %v1079_v11 = vld [vmem:[%s3811_s13 + $0x2b0] sm:$0xff] }
 0x294   :  { %v2403_v13 = vpack.c.bf16 %v1086_v12, %v1079_v11 }
 0x295   :  { %2140 = vmatmul.mubr.f32.gmra.mrb[22].mxu0 %v808_v48  ;;  %2360 = vmatpush1.bf16.msra.mxu1 %v2359_v36  ;;  %v2393_v48 = vpack.c.bf16 %v1059_v45, %v1052_v43 }
 0x296   :  { %2142 = vmatprep.mubr.msk.f32.mxu0 %vm2642_vm1, %v2643_v37  ;;  %2384 = vmatpush1.bf16.msra.mxu0 %v2383_v15  ;;  %v1099_v15 = vld [vmem:[%s3811_s13 + $0x350] sm:$0xff] }
 0x297   :  { %2386 = vmatprep.subr.bf16.mxu0 %v2385_v23  ;;  %2362 = vmatprep.subr.bf16.mxu1 %v2361_v44  ;;  %v2373_v17 = vpack.c.bf16 %v1099_v15, %v1092_v14  ;;  %v1093_v23 = vld [vmem:[%s3811_s13 + $0x320] sm:$0xff] }
 0x298   :  { %v2407_v25 = vpack.c.bf16 %v1100_v24, %v1093_v23  ;;  %v997_v23 = vld [vmem:[%s3811_s13 + $0x20] sm:$0xff] }
 0x299   :  { %2143 = vmatmul.mubr.f32.gmra.mrb[24].mxu0 %v809_v50  ;;  %v1051_v50 = vld [vmem:[%s3811_s13 + $0x1d0] sm:$0xff]  ;;  %2364 = vmatpush1.bf16.msra.mxu1 %v2363_v49 }
 0x29a   :  { %2145 = vmatprep.mubr.msk.f32.mxu0 %vm2642_vm1, %v2643_v37  ;;  %2388 = vmatpush1.bf16.msra.mxu0 %v2387_v27  ;;  %v1005_v27 = vld [vmem:[%s3811_s13 + $0x60] sm:$0xff] }
 0x29b   :  { %2390 = vmatprep.subr.bf16.mxu0 %v2389_v35  ;;  %v2409_v28 = vpack.c.bf16 %v1005_v27, %v998_v26  ;;  %v1004_v26 = vld [vmem:[%s3811_s13 + $0x58] sm:$0xff]  ;;  %v999_v27 = vld [vmem:[%s3811_s13 + $0x30] sm:$0xff] }
 0x29d   :  { %2146 = vmatmul.mubr.f32.gmra.mrb[26].mxu0 %v810_v53  ;;  %v2395_v53 = vpack.c.bf16 %v1058_v51, %v1051_v50 }
 0x29e   :  { %2148 = vmatprep.mubr.msk.f32.mxu0 %vm2642_vm1, %v2643_v37  ;;  %2392 = vmatpush1.bf16.msra.mxu0 %v2391_v40 }
 0x29f   :  { %2394 = vmatprep.subr.bf16.mxu0 %v2393_v48 }
 0x2a1   :  { %2149 = vmatmul.mubr.f32.gmra.mrb[28].mxu0 %v811_v55  ;;  %v1071_v55 = vld [vmem:[%s3811_s13 + $0x270] sm:$0xff] }
 0x2a2   :  { %1301 = vmatprep.mubr.f32.mxu0 %v2643_v37  ;;  %2396 = vmatpush1.bf16.msra.mxu0 %v2395_v53  ;;  %v2365_v57 = vpack.c.bf16 %v1071_v55, %v1064_v54 }
 0x2a3   :  { %2398 = vmatprep.subr.bf16.mxu0 %v2397_v61 }
 0x2a4   :  { %2366 = vmatprep.subr.bf16.mxu1 %v2365_v57 }
 0x2a5   :  { %2368 = vmatpush1.bf16.msra.mxu1 %v2367_v62 }
 0x2a6   :  { %2400 = vmatpush1.bf16.msra.mxu0 %v2399_v1  ;;  %2370 = vmatprep.subr.bf16.mxu1 %v2369_v5 }
 0x2a7   :  { %2402 = vmatprep.subr.bf16.mxu0 %v2401_v9 }
 0x2a9   :  { %2372 = vmatpush1.bf16.msra.mxu1 %v2371_v10 }
 0x2aa   :  { %2404 = vmatpush1.bf16.msra.mxu0 %v2403_v13  ;;  %2374 = vmatprep.subr.bf16.mxu1 %v2373_v17 }
 0x2ab   :  { %2406 = vmatprep.subr.bf16.mxu0 %v2405_v21 }
 0x2ad   :  { %2376 = vmatpush1.bf16.msra.mxu1 %v2375_v22  ;;  %v3499_v22 = vld [vmem:[%s3809_s11] ss:$0 sm:$0xff] }
 0x2ae   :  { %2408 = vmatpush1.bf16.msra.mxu0 %v2407_v25  ;;  %2410 = vmatprep.subr.bf16.mxu1 %v2409_v28  ;;  %v1006_v28 = vld [vmem:[%s3811_s13 + $0x68] sm:$0xff] }
 0x2af   :  { %2441 = vmatprep.subr.bf16.mxu0 %v2641_v52 }
 0x364   :  { %v901_v30 = vpop.f32.mrb[20].mxu0 }
 0x365   :  { %v2138_v31 = vpop.f32.mrb[21].mxu0  ;;  %v902_v32 = vadd.f32 %v1789_v29, %v901_v30 }
 0x366   :  { %v3518_v31 = vld [vmem:[%s3810_s12] ss:$0 sm:$0xff] }
 0x367   :  { %v925_v36 = vmax.f32 %v902_v32, 0.0 }
 0x368   :  { %v906_v33 = vpop.f32.mrb[22].mxu0 }
 0x369   :  { %v907_v34 = vadd.f32 %v1789_v29, %v906_v33  ;;  %v2141_v35 = vpop.f32.mrb[23].mxu0 }
 0x36a   :  { %v1019_v35 = vld [vmem:[%s3811_s13 + $0xd0] sm:$0xff] }
 0x36b   :  { %v926_v38 = vmax.f32 %v907_v34, 0.0  ;;  %v1012_v34 = vld [vmem:[%s3811_s13 + $0x98] sm:$0xff] }
 0x36c   :  { %v911_v39 = vpop.f32.mrb[24].mxu0 }
 0x36d   :  { %v932_v40 = vadd.f32 %v926_v38, %v925_v36  ;;  %v912_v41 = vadd.f32 %v1789_v29, %v911_v39  ;;  %v2144_v42 = vpop.f32.mrb[25].mxu0  ;;  %v1011_v39 = vld [vmem:[%s3811_s13 + $0x90] sm:$0xff] }
 0x36e   :  { %v1018_v42 = vld [vmem:[%s3811_s13 + $0xc8] sm:$0xff] }
 0x36f   :  { %v927_v43 = vmax.f32 %v912_v41, 0.0 }
 0x370   :  { %v916_v44 = vpop.f32.mrb[26].mxu0 }
 0x371   :  { %v933_v45 = vadd.f32 %v932_v40, %v927_v43  ;;  %v917_v46 = vadd.f32 %v1789_v29, %v916_v44  ;;  %v2147_v47 = vpop.f32.mrb[27].mxu0  ;;  %v1020_v44 = vld [vmem:[%s3811_s13 + $0xd8] sm:$0xff] }
 0x372   :  { %v1033_v47 = vld [vmem:[%s3811_s13 + $0x140] sm:$0xff] }
 0x373   :  { %v928_v48 = vmax.f32 %v917_v46, 0.0  ;;  %v1026_v46 = vld [vmem:[%s3811_s13 + $0x108] sm:$0xff] }
 0x374   :  { %v921_v49 = vpop.f32.mrb[28].mxu0 }
 0x375   :  { %v934_v50 = vadd.f32 %v933_v45, %v928_v48  ;;  %v922_v51 = vadd.f32 %v1789_v29, %v921_v49  ;;  %v2150_v53 = vpop.f32.mrb[29].mxu0  ;;  %v2413_v45 = vpack.c.bf16 %v1019_v35, %v1012_v34  ;;  %v1090_v34 = vld [vmem:[%s3811_s13 + $0x308] sm:$0xff]  ;;  %v1096_v35 = vld [vmem:[%s3811_s13 + $0x338] sm:$0xff] }
 0x377   :  { %v929_v54 = vmax.f32 %v922_v51, 0.0 }
 0x379   :  { %v935_v55 = vadd.f32 %v934_v50, %v929_v54  ;;  %v1025_v50 = vld [vmem:[%s3811_s13 + $0x100] sm:$0xff] }
 0x37b   :  { %v936_v56 = vrot.slane %v935_v55, 4 }
 0x37d   :  { %v937_v57 = vadd.f32 %v936_v56, %v935_v55  ;;  %v1027_v55 = vld [vmem:[%s3811_s13 + $0x110] sm:$0xff]  ;;  %v1034_v56 = vld [vmem:[%s3811_s13 + $0x148] sm:$0xff] }
 0x37f   :  { %v938_v58 = vrot.slane %v937_v57, 2 }
 0x381   :  { %v939_v59 = vadd.f32 %v938_v58, %v937_v57  ;;  %v2417_v57 = vpack.c.bf16 %v1033_v47, %v1026_v46  ;;  %v1040_v58 = vld [vmem:[%s3811_s13 + $0x178] sm:$0xff] }
 0x383   :  { %v940_v60 = vrot.slane %v939_v59, 1 }
 0x385   :  { %v941_v61 = vadd.f32 %v940_v60, %v939_v59  ;;  %v1047_v59 = vld [vmem:[%s3811_s13 + $0x1b0] sm:$0xff] }
 0x387   :  { %v942_v62 = vmul.f32 0.025, %v941_v61  ;;  %v2448_v61 = vpack.c.bf16 %v1034_v56, %v1027_v55 }
 0x389   :  { %v943_v63 = vsub.f32 %v925_v36, %v942_v62  ;;  %v944_v0 = vsub.f32 %v926_v38, %v942_v62  ;;  %v945_v1 = vsub.f32 %v927_v43, %v942_v62  ;;  %v946_v2 = vsub.f32 %v928_v48, %v942_v62  ;;  %v1013_v43 = vld [vmem:[%s3811_s13 + $0xa0] sm:$0xff] }
 0x38a   :  { %v947_v3 = vsub.f32 %v929_v54, %v942_v62  ;;  %v2411_v36 = vpack.c.bf16 %v1004_v26, %v997_v23  ;;  %v2442_v38 = vpack.c.bf16 %v1006_v28, %v999_v27  ;;  %v2415_v48 = vpack.c.bf16 %v1018_v42, %v1011_v39  ;;  %v1032_v54 = vld [vmem:[%s3811_s13 + $0x138] sm:$0xff]  ;;  %v1039_v62 = vld [vmem:[%s3811_s13 + $0x170] sm:$0xff]  ;;  %v1074_v23 = vld [vmem:[%s3811_s13 + $0x288] sm:$0xff] }
 0x38b   :  { %v948_v4 = vmul.f32 %v943_v63, %v943_v63  ;;  %v949_v5 = vmul.f32 %v944_v0, %v944_v0  ;;  %v950_v6 = vmul.f32 %v945_v1, %v945_v1  ;;  %v951_v8 = vmul.f32 %v946_v2, %v946_v2  ;;  %v1082_v26 = vld [vmem:[%s3811_s13 + $0x2c8] sm:$0xff]  ;;  %v1089_v27 = vld [vmem:[%s3811_s13 + $0x300] sm:$0xff] }
 0x38c   :  { %v952_v10 = vmul.f32 %v947_v3, %v947_v3  ;;  %v2445_v49 = vpack.c.bf16 %v1020_v44, %v1013_v43  ;;  %v2419_v60 = vpack.c.bf16 %v1032_v54, %v1025_v50  ;;  %v1102_v43 = vld [vmem:[%s3811_s13 + $0x368] sm:$0xff]  ;;  %v1097_v44 = vld [vmem:[%s3811_s13 + $0x340] sm:$0xff] }
 0x38d   :  { %v953_v7 = vadd.f32 %v949_v5, %v948_v4  ;;  %v2421_v4 = vpack.c.bf16 %v1047_v59, %v1040_v58  ;;  %v1054_v5 = vld [vmem:[%s3811_s13 + $0x1e8] sm:$0xff]  ;;  %v3718_v50 = vld [vmem:[%s3812_s14] sm:$0x7f]  ;;  %s2644_s14 = smov [#allocation2]  }
 0x38e   :  { %s1767_s22 = sshll.u32 %s2644_s14, 4  ;;  %s1768_s22 = int_to_ptr.vmem [resolvable:$true] %s1767_s22 }
 0x38f   :  { %v954_v9 = vadd.f32 %v953_v7, %v950_v6  ;;  %v1061_v6 = vld [vmem:[%s3811_s13 + $0x220] sm:$0xff]  ;;  %s2617_s6 = scalar_lea.vmem %s1768_s22, 4480  ;;  %p2622_p1 = scmp.lt.s32.totalorder %s1768_s22, %s1768_s22 }
 0x390   :  { %p2618_p0 = scmp.ne.s32.totalorder %s1768_s22, %s2617_s6  ;;  %p2623_p2 = scmp.lt.s32.totalorder %s2617_s6, %s2617_s6 }
 0x391   :  { %v955_v11 = vadd.f32 %v954_v9, %v951_v8  ;;  %v1053_v9 = vld [vmem:[%s3811_s13 + $0x1e0] sm:$0xff] }
 0x392   :  { %p2624_p3 = por %p2623_p2, %p2622_p1 }
 0x393   :  { %v956_v12 = vadd.f32 %v955_v11, %v952_v10 }
 0x394   :  { %p2625_p4 = pnand %p2624_p3, %p2618_p0 }
 0x395   :  { %v957_v13 = vrot.slane %v956_v12, 4 }
 0x397   :  { %v958_v14 = vadd.f32 %v957_v13, %v956_v12  ;;  %v1060_v12 = vld [vmem:[%s3811_s13 + $0x218] sm:$0xff]  ;;  %v1055_v13 = vld [vmem:[%s3811_s13 + $0x1f0] sm:$0xff] }
 0x399   :  { %v959_v15 = vrot.slane %v958_v14, 2 }
 0x39b   :  { %v960_v16 = vadd.f32 %v959_v15, %v958_v14  ;;  %v1062_v14 = vld [vmem:[%s3811_s13 + $0x228] sm:$0xff]  ;;  %v2425_v15 = vpack.c.bf16 %v1061_v6, %v1054_v5 }
 0x39d   :  { %v961_v17 = vrot.slane %v960_v16, 1 }
 0x39f   :  { %v962_v18 = vadd.f32 %v961_v17, %v960_v16  ;;  %v1068_v16 = vld [vmem:[%s3811_s13 + $0x258] sm:$0xff]  ;;  %v1075_v17 = vld [vmem:[%s3811_s13 + $0x290] sm:$0xff] }
 0x3a1   :  { %v963_v19 = vmul.f32 0.025, %v962_v18  ;;  %v2427_v18 = vpack.c.bf16 %v1060_v12, %v1053_v9 }
 0x3a3   :  { %v964_v20 = vadd.f32 1e-05, %v963_v19  ;;  %v2454_v19 = vpack.c.bf16 %v1062_v14, %v1055_v13 }
 0x3a5   :  { %2475 = vrsqrt.f32 %v964_v20  ;;  %v1067_v20 = vld [vmem:[%s3811_s13 + $0x250] sm:$0xff] }
 0x3a6   :  { %v2431_v28 = vpack.c.bf16 %v1074_v23, %v1067_v20 }
 0x3af   :  { %v2476_v21 = vpop.eup %2475 }
 0x3b0   :  { %v3504_v24 = vmul.f32 %v2476_v21, %v947_v3  ;;  %v966_v25 = vmul.f32 %v2476_v21, %v943_v63  ;;  %v967_v29 = vmul.f32 %v2476_v21, %v944_v0  ;;  %v968_v30 = vmul.f32 %v2476_v21, %v945_v1  ;;  %v1046_v1 = vld [vmem:[%s3811_s13 + $0x1a8] sm:$0xff]  ;;  %v1048_v3 = vld [vmem:[%s3811_s13 + $0x1b8] sm:$0xff] }
 0x3b1   :  { %v969_v32 = vmul.f32 %v2476_v21, %v946_v2  ;;  %v1041_v2 = vld [vmem:[%s3811_s13 + $0x180] sm:$0xff]  ;;  %v2423_v7 = vpack.c.bf16 %v1046_v1, %v1039_v62 }
 0x3b2   :  { %v977_v33 = vmul.f32 %v3499_v22, %v966_v25  ;;  %v978_v41 = vmul.f32 %v3499_v22, %v967_v29  ;;  %v979_v53 = vmul.f32 %v3499_v22, %v968_v30  ;;  %v2451_v8 = vpack.c.bf16 %v1048_v3, %v1041_v2  ;;  %v1076_v25 = vld [vmem:[%s3811_s13 + $0x298] sm:$0xff]  ;;  %v1081_v30 = vld [vmem:[%s3811_s13 + $0x2c0] sm:$0xff] }
 0x3b3   :  { %v980_v0 = vmul.f32 %v3499_v22, %v969_v32  ;;  %v981_v10 = vmul.f32 %v3499_v22, %v3504_v24  ;;  %v2429_v22 = vpack.c.bf16 %v1075_v17, %v1068_v16  ;;  %v1069_v24 = vld [vmem:[%s3811_s13 + $0x260] sm:$0xff]  ;;  %v1088_v32 = vld [vmem:[%s3811_s13 + $0x2f8] sm:$0xff] }
 0x3b4   :  { %v3531_v40 = vadd.f32 %v3518_v31, %v977_v33  ;;  %v3557_v51 = vadd.f32 %v3518_v31, %v978_v41  ;;  %v3584_v63 = vadd.f32 %v3518_v31, %v979_v53  ;;  %v2457_v29 = vpack.c.bf16 %v1076_v25, %v1069_v24  ;;  %v1083_v33 = vld [vmem:[%s3811_s13 + $0x2d0] sm:$0xff] }
 0x3b5   :  { %v3613_v11 = vadd.f32 %v3518_v31, %v980_v0  ;;  %v992_v21 = vadd.f32 %v3518_v31, %v981_v10  ;;  %v2433_v31 = vpack.c.bf16 %v1089_v27, %v1082_v26  ;;  %v2460_v39 = vpack.c.bf16 %v1090_v34, %v1083_v33  ;;  %v1095_v41 = vld [vmem:[%s3811_s13 + $0x330] sm:$0xff] }
 0x3b6   :  { %1207 = vmatmul.mubr.f32.vlgmr.msra.gmra.mrb[30].mxu1 %v3531_v40  ;;  %1302 = vmatmul.mubr.f32.vlgmr.msra.gmra.mrb[30].mxu0 %v3531_v40  ;;  %v2439_v46 = vpack.c.bf16 %v1102_v43, %v1095_v41 }
 0x3b7   :  { %2412 = vmatpush1.bf16.msra.mxu1 %v2411_v36  ;;  %2443 = vmatpush3.bf16.msra.mxu0 %v2442_v38  ;;  %v1103_v36 = vld [vmem:[%s3811_s13 + $0x370] sm:$0xff]  ;;  %v2435_v38 = vpack.c.bf16 %v1088_v32, %v1081_v30 }
 0x3b8   :  { %1212 = vmatprep.mubr.f32.mxu1 %v2643_v37  ;;  %1307 = vmatprep.mubr.f32.mxu0 %v2643_v37  ;;  %v2437_v42 = vpack.c.bf16 %v1103_v36, %v1096_v35 }
 0x3b9   :  { %2414 = vmatprep.subr.bf16.mxu1 %v2413_v45  ;;  %2444 = vmatprep.subr.bf16.mxu0 %v2641_v52  ;;  %v1104_v45 = vld [vmem:[%s3811_s13 + $0x378] sm:$0xff] }
 0x3ba   :  { %1213 = vmatmul.mubr.f32.gmra.mrb[32].mxu1 %v3557_v51  ;;  %1308 = vmatmul.mubr.f32.gmra.mrb[32].mxu0 %v3557_v51  ;;  %v2463_v47 = vpack.c.bf16 %v1104_v45, %v1097_v44 }
 0x3bb   :  { %2416 = vmatpush1.bf16.msra.mxu1 %v2415_v48  ;;  %2446 = vmatpush3.bf16.msra.mxu0 %v2445_v49 }
 0x3bc   :  { %1218 = vmatprep.mubr.f32.mxu1 %v2643_v37  ;;  %1313 = vmatprep.mubr.f32.mxu0 %v2643_v37 }
 0x3bd   :  { %2418 = vmatprep.subr.bf16.mxu1 %v2417_v57  ;;  %2447 = vmatprep.subr.bf16.mxu0 %v2641_v52 }
 0x3be   :  { %1219 = vmatmul.mubr.f32.gmra.mrb[34].mxu1 %v3584_v63  ;;  %1314 = vmatmul.mubr.f32.gmra.mrb[34].mxu0 %v3584_v63 }
 0x3bf   :  { %2420 = vmatpush1.bf16.msra.mxu1 %v2419_v60  ;;  %2449 = vmatpush3.bf16.msra.mxu0 %v2448_v61 }
 0x3c0   :  { %1224 = vmatprep.mubr.f32.mxu1 %v2643_v37  ;;  %1319 = vmatprep.mubr.f32.mxu0 %v2643_v37 }
 0x3c1   :  { %2422 = vmatprep.subr.bf16.mxu1 %v2421_v4  ;;  %2450 = vmatprep.subr.bf16.mxu0 %v2641_v52 }
 0x3c2   :  { %1225 = vmatmul.mubr.f32.gmra.mrb[36].mxu1 %v3613_v11  ;;  %1320 = vmatmul.mubr.f32.gmra.mrb[36].mxu0 %v3613_v11 }
 0x3c3   :  { %2424 = vmatpush1.bf16.msra.mxu1 %v2423_v7  ;;  %2452 = vmatpush3.bf16.msra.mxu0 %v2451_v8 }
 0x3c4   :  { %1230 = vmatprep.mubr.f32.mxu1 %v2643_v37  ;;  %1325 = vmatprep.mubr.f32.mxu0 %v2643_v37 }
 0x3c5   :  { %2426 = vmatprep.subr.bf16.mxu1 %v2425_v15  ;;  %2453 = vmatprep.subr.bf16.mxu0 %v2641_v52 }
 0x3c6   :  { %1231 = vmatmul.mubr.f32.gmra.mrb[38].mxu1 %v992_v21  ;;  %1326 = vmatmul.mubr.f32.gmra.mrb[38].mxu0 %v992_v21 }
 0x3c7   :  { %2428 = vmatpush1.bf16.msra.mxu1 %v2427_v18  ;;  %2455 = vmatpush3.bf16.msra.mxu0 %v2454_v19 }
 0x3c8   :  { %2430 = vmatprep.subr.bf16.mxu1 %v2429_v22  ;;  %2456 = vmatprep.subr.bf16.mxu0 %v2641_v52 }
 0x3c9   :  { %1396 = vmatprep.mubr.f32.mxu1 %v2643_v37  ;;  %2183 = vmatprep.mubr.msk.f32.mxu0 %vm2642_vm1, %v2643_v37 }
 0x3cb   :  { %2432 = vmatpush1.bf16.msra.mxu1 %v2431_v28  ;;  %2458 = vmatpush3.bf16.msra.mxu0 %v2457_v29 }
 0x3cc   :  { %2434 = vmatprep.subr.bf16.mxu1 %v2433_v31  ;;  %2459 = vmatprep.subr.bf16.mxu0 %v2641_v52 }
 0x3cf   :  { %2436 = vmatpush1.bf16.msra.mxu1 %v2435_v38  ;;  %2461 = vmatpush3.bf16.msra.mxu0 %v2460_v39 }
 0x3d0   :  { %2438 = vmatprep.subr.bf16.mxu1 %v2437_v42  ;;  %2462 = vmatprep.subr.bf16.mxu0 %v2641_v52  ;;  %v1107_v52 = vlaneseq }
 0x3d3   :  { %2440 = vmatpush1.bf16.msra.mxu1 %v2439_v46  ;;  %2464 = vmatpush3.bf16.msra.mxu0 %v2463_v47 }
 0x3d6   :  { %1397 = vmatmul.mubr.f32.vlgmr.msra.gmra.mrb[40].mxu1 %v3531_v40  ;;  %2184 = vmatmul.mubr.f32.vlgmr.msra.gmra.mrb[40].mxu0 %v3531_v40  ;;  %v3711_v40 = vshrl.u32 %v1107_v52, 7 }
 0x3d7   :  { %1402 = vmatprep.mubr.f32.mxu1 %v2643_v37  ;;  %2186 = vmatprep.mubr.msk.f32.mxu0 %vm2642_vm1, %v2643_v37 }
 0x3d8   :  { %v1109_v48 = vsub.s32 0, %v3711_v40  ;;  %v1117_v49 = vsub.s32 2, %v3711_v40  ;;  %v1121_v53 = vsub.s32 3, %v3711_v40 }
 0x3da   :  { %1403 = vmatmul.mubr.f32.gmra.mrb[42].mxu1 %v3557_v51  ;;  %2187 = vmatmul.mubr.f32.gmra.mrb[42].mxu0 %v3557_v51  ;;  %v1113_v51 = vsub.s32 1, %v3711_v40  ;;  %v3726_v54 = vrot.slane %v3718_v50, %v1117_v49  ;;  %v3732_v56 = vrot.slane %v3718_v50, %v1121_v53 }
 0x3db   :  { %1408 = vmatprep.mubr.f32.mxu1 %v2643_v37  ;;  %2189 = vmatprep.mubr.msk.f32.mxu0 %vm2642_vm1, %v2643_v37 }
 0x3dc   :  { %v3729_v55 = vrot.slane %v3718_v50, %v1113_v51 }
 0x3de   :  { %1409 = vmatmul.mubr.f32.gmra.mrb[44].mxu1 %v3584_v63  ;;  %2190 = vmatmul.mubr.f32.gmra.mrb[44].mxu0 %v3584_v63 }
 0x3df   :  { %1414 = vmatprep.mubr.f32.mxu1 %v2643_v37  ;;  %2192 = vmatprep.mubr.msk.f32.mxu0 %vm2642_vm1, %v2643_v37 }
 0x3e2   :  { %1415 = vmatmul.mubr.f32.gmra.mrb[46].mxu1 %v3613_v11  ;;  %2193 = vmatmul.mubr.f32.gmra.mrb[46].mxu0 %v3613_v11 }
 0x3e3   :  { %1420 = vmatprep.mubr.f32.mxu1 %v2643_v37  ;;  %2195 = vmatprep.mubr.msk.f32.mxu0 %vm2642_vm1, %v2643_v37  ;;  %v3723_v37 = vrot.slane %v3718_v50, %v1109_v48 }
 0x3e6   :  { %1421 = vmatmul.mubr.f32.gmra.mrb[48].mxu1 %v992_v21  ;;  %2196 = vmatmul.mubr.f32.gmra.mrb[48].mxu0 %v992_v21 }
 0x489   :  { %v1208_v57 = vpop.f32.mrb[30].mxu1  ;;  %v1303_v58 = vpop.f32.mrb[30].mxu0 }
 0x48a   :  { %v1209_v59 = vadd.f32 %v1208_v57, %v3723_v37  ;;  %v1304_v60 = vadd.f32 %v1303_v58, %v3726_v54  ;;  %v1210_v61 = vpop.f32.mrb[31].mxu1  ;;  %v1305_v62 = vpop.f32.mrb[31].mxu0 }
 0x48b   :  { %v1211_v63 = vadd.f32 %v1210_v61, %v3729_v55  ;;  %v1306_v0 = vadd.f32 %v1305_v62, %v3732_v56 }
 0x48c   :  { %v1792_v1 = vmul.f32 -1.442695, %v1209_v59  ;;  %v1794_v2 = vmul.f32 -1.442695, %v1304_v60  ;;  %v1125_v60 = vsub.s32 4, %v3711_v40 }
 0x48d   :  { %v1793_v3 = vmul.f32 -1.442695, %v1211_v63  ;;  %v1795_v4 = vmul.f32 -1.442695, %v1306_v0  ;;  %v1214_v5 = vpop.f32.mrb[32].mxu1  ;;  %v1309_v6 = vpop.f32.mrb[32].mxu0 }
 0x48e   :  { %2477 = vpow2.f32 %v1792_v1  ;;  %v1215_v7 = vadd.f32 %v1214_v5, %v3723_v37  ;;  %v1310_v8 = vadd.f32 %v1309_v6, %v3726_v54  ;;  %v1216_v9 = vpop.f32.mrb[33].mxu1  ;;  %v1311_v10 = vpop.f32.mrb[33].mxu0 }
 0x48f   :  { %2479 = vpow2.f32 %v1794_v2  ;;  %v1217_v11 = vadd.f32 %v1216_v9, %v3729_v55  ;;  %v1312_v12 = vadd.f32 %v1311_v10, %v3732_v56 }
 0x490   :  { %2481 = vpow2.f32 %v1793_v3  ;;  %v1799_v13 = vmul.f32 -1.442695, %v1215_v7  ;;  %v1801_v14 = vmul.f32 -1.442695, %v1310_v8  ;;  %v1133_v3 = vsub.s32 6, %v3711_v40 }
 0x491   :  { %2483 = vpow2.f32 %v1795_v4  ;;  %v1800_v15 = vmul.f32 -1.442695, %v1217_v11  ;;  %v1802_v16 = vmul.f32 -1.442695, %v1312_v12  ;;  %v1220_v17 = vpop.f32.mrb[34].mxu1  ;;  %v1315_v18 = vpop.f32.mrb[34].mxu0  ;;  %v3755_v11 = vrot.slane %v3718_v50, %v1125_v60 }
 0x492   :  { %2485 = vpow2.f32 %v1799_v13  ;;  %v1221_v19 = vadd.f32 %v1220_v17, %v3723_v37  ;;  %v1316_v20 = vadd.f32 %v1315_v18, %v3726_v54  ;;  %v1222_v21 = vpop.f32.mrb[35].mxu1  ;;  %v1317_v22 = vpop.f32.mrb[35].mxu0  ;;  %v1129_v7 = vsub.s32 5, %v3711_v40 }
 0x493   :  { %2487 = vpow2.f32 %v1801_v14  ;;  %v1223_v23 = vadd.f32 %v1222_v21, %v3729_v55  ;;  %v1318_v24 = vadd.f32 %v1317_v22, %v3732_v56  ;;  %v3761_v21 = vrot.slane %v3718_v50, %v1133_v3 }
 0x494   :  { %2489 = vpow2.f32 %v1800_v15  ;;  %v1806_v25 = vmul.f32 -1.442695, %v1221_v19  ;;  %v1808_v26 = vmul.f32 -1.442695, %v1316_v20 }
 0x495   :  { %2491 = vpow2.f32 %v1802_v16  ;;  %v1807_v27 = vmul.f32 -1.442695, %v1223_v23  ;;  %v1809_v28 = vmul.f32 -1.442695, %v1318_v24  ;;  %v1226_v29 = vpop.f32.mrb[36].mxu1  ;;  %v1321_v30 = vpop.f32.mrb[36].mxu0 }
 0x496   :  { %2493 = vpow2.f32 %v1806_v25  ;;  %v1227_v31 = vadd.f32 %v1226_v29, %v3723_v37  ;;  %v1228_v32 = vpop.f32.mrb[37].mxu1  ;;  %v1323_v33 = vpop.f32.mrb[37].mxu0  ;;  %v1322_v63 = vadd.f32 %v1321_v30, %v3726_v54 }
 0x497   :  { %2495 = vpow2.f32 %v1808_v26  ;;  %v1229_v2 = vadd.f32 %v1228_v32, %v3729_v55  ;;  %v1324_v6 = vadd.f32 %v1323_v33, %v3732_v56 }
 0x498   :  { %v2478_v34 = vpop.eup %2477  ;;  %2497 = vpow2.f32 %v1807_v27  ;;  %v1813_v35 = vmul.f32 -1.442695, %v1227_v31  ;;  %v1815_v14 = vmul.f32 -1.442695, %v1322_v63 }
 0x499   :  { %v2480_v36 = vpop.eup %2479  ;;  %v1622_v38 = vadd.f32 1.0, %v2478_v34  ;;  %2499 = vpow2.f32 %v1809_v28  ;;  %v1232_v39 = vpop.f32.mrb[38].mxu1  ;;  %v1814_v18 = vmul.f32 -1.442695, %v1229_v2  ;;  %v1816_v20 = vmul.f32 -1.442695, %v1324_v6 }
 0x49a   :  { %v2482_v41 = vpop.eup %2481  ;;  %v1624_v42 = vadd.f32 1.0, %v2480_v36  ;;  %2501 = vpow2.f32 %v1813_v35  ;;  %v1327_v43 = vpop.f32.mrb[38].mxu0  ;;  %v1233_v10 = vadd.f32 %v1232_v39, %v3723_v37 }
 0x49b   :  { %v1234_v44 = vpop.f32.mrb[39].mxu1  ;;  %v2484_v45 = vpop.eup %2483  ;;  %2503 = vrcp.f32 %v1622_v38  ;;  %v1623_v46 = vadd.f32 1.0, %v2482_v41  ;;  %v1328_v15 = vadd.f32 %v1327_v43, %v3726_v54  ;;  %v3764_v54 = vrot.slane %v3718_v50, %v1129_v7 }
 0x49c   :  { %v1329_v47 = vpop.f32.mrb[39].mxu0  ;;  %v2486_v52 = vpop.eup %2485  ;;  %2505 = vrcp.f32 %v1624_v42  ;;  %v1625_v48 = vadd.f32 1.0, %v2484_v45  ;;  %v1235_v40 = vadd.f32 %v1234_v44, %v3729_v55  ;;  %v1820_v23 = vmul.f32 -1.442695, %v1233_v10 }
 0x49d   :  { %v2488_v49 = vpop.eup %2487  ;;  %2507 = vrcp.f32 %v1623_v46  ;;  %v1629_v51 = vadd.f32 1.0, %v2486_v52  ;;  %v1330_v37 = vadd.f32 %v1329_v47, %v3732_v56  ;;  %v1822_v55 = vmul.f32 -1.442695, %v1328_v15 }
 0x49e   :  { %v2490_v53 = vpop.eup %2489  ;;  %2509 = vrcp.f32 %v1625_v48  ;;  %v1631_v57 = vadd.f32 1.0, %v2488_v49  ;;  %v1821_v26 = vmul.f32 -1.442695, %v1235_v40 }
 0x49f   :  { %v2492_v58 = vpop.eup %2491  ;;  %2511 = vrcp.f32 %v1629_v51  ;;  %v1630_v59 = vadd.f32 1.0, %v2490_v53  ;;  %v1823_v29 = vmul.f32 -1.442695, %v1330_v37 }
 0x4a0   :  { %v2494_v61 = vpop.eup %2493  ;;  %2513 = vrcp.f32 %v1631_v57  ;;  %v1632_v62 = vadd.f32 1.0, %v2492_v58 }
 0x4a1   :  { %v2496_v0 = vpop.eup %2495  ;;  %2515 = vrcp.f32 %v1630_v59  ;;  %v1636_v1 = vadd.f32 1.0, %v2494_v61 }
 0x4a2   :  { %v2498_v4 = vpop.eup %2497  ;;  %2517 = vrcp.f32 %v1632_v62  ;;  %v1638_v5 = vadd.f32 1.0, %v2496_v0 }
 0x4a3   :  { %v2500_v8 = vpop.eup %2499  ;;  %2519 = vrcp.f32 %v1636_v1  ;;  %v1637_v9 = vadd.f32 1.0, %v2498_v4 }
 0x4a4   :  { %v2502_v12 = vpop.eup %2501  ;;  %2521 = vrcp.f32 %v1638_v5  ;;  %v1639_v13 = vadd.f32 1.0, %v2500_v8 }
 0x4a5   :  { %v2504_v16 = vpop.eup %2503  ;;  %2523 = vrcp.f32 %v1637_v9  ;;  %v1643_v17 = vadd.f32 1.0, %v2502_v12 }
 0x4a6   :  { %v2506_v19 = vpop.eup %2505  ;;  %1727 = vst [vmem:[#allocation2] sm:$0xff] %v2504_v16  ;;  %2525 = vrcp.f32 %v1639_v13 }
 0x4a7   :  { %v2508_v22 = vpop.eup %2507  ;;  %1729 = vst [vmem:[#allocation2 + $0x10] sm:$0xff] %v2506_v19  ;;  %2527 = vrcp.f32 %v1643_v17 }
 0x4a8   :  { %v2510_v24 = vpop.eup %2509  ;;  %1728 = vst [vmem:[#allocation2 + $0x8] sm:$0xff] %v2508_v22  ;;  %2529 = vpow2.f32 %v1815_v14 }
 0x4a9   :  { %v2512_v25 = vpop.eup %2511  ;;  %1730 = vst [vmem:[#allocation2 + $0x18] sm:$0xff] %v2510_v24  ;;  %2531 = vpow2.f32 %v1814_v18  ;;  %v1398_v27 = vpop.f32.mrb[40].mxu1 }
 0x4aa   :  { %v1493_v56 = vpop.f32.mrb[40].mxu0  ;;  %v2514_v28 = vpop.eup %2513  ;;  %1734 = vst [vmem:[#allocation2 + $0x38] sm:$0xff] %v2512_v25  ;;  %2533 = vpow2.f32 %v1816_v20  ;;  %v1399_v30 = vadd.f32 %v1398_v27, %v3755_v11 }
 0x4ab   :  { %v1494_v31 = vadd.f32 %v1493_v56, %v3761_v21  ;;  %v1400_v50 = vpop.f32.mrb[41].mxu1  ;;  %v2185_v32 = vpop.f32.mrb[41].mxu0  ;;  %1736 = vst [vmem:[#allocation2 + $0x48] sm:$0xff] %v2514_v28  ;;  %2535 = vpow2.f32 %v1820_v23 }
 0x4ac   :  { %v2516_v33 = vpop.eup %2515  ;;  %v1401_v34 = vadd.f32 %v1400_v50, %v3764_v54  ;;  %2537 = vpow2.f32 %v1822_v55  ;;  %v1796_v36 = vmul.f32 -1.442695, %v1399_v30 }
 0x4ad   :  { %v2518_v35 = vpop.eup %2517  ;;  %1735 = vst [vmem:[#allocation2 + $0x40] sm:$0xff] %v2516_v33  ;;  %v1798_v38 = vmul.f32 -1.442695, %v1494_v31  ;;  %2539 = vpow2.f32 %v1821_v26  ;;  %v1404_v42 = vpop.f32.mrb[42].mxu1 }
 0x4ae   :  { %v2520_v39 = vpop.eup %2519  ;;  %1737 = vst [vmem:[#allocation2 + $0x50] sm:$0xff] %v2518_v35  ;;  %v1797_v41 = vmul.f32 -1.442695, %v1401_v34  ;;  %v1498_v43 = vpop.f32.mrb[42].mxu0  ;;  %2541 = vpow2.f32 %v1823_v29  ;;  %v1405_v45 = vadd.f32 %v1404_v42, %v3755_v11 }
 0x4af   :  { %v2522_v44 = vpop.eup %2521  ;;  %1741 = vst [vmem:[#allocation2 + $0x70] sm:$0xff] %v2520_v39  ;;  %v1499_v46 = vadd.f32 %v1498_v43, %v3761_v21  ;;  %v1406_v47 = vpop.f32.mrb[43].mxu1  ;;  %2543 = vpow2.f32 %v1796_v36 }
 0x4b0   :  { %v2188_v52 = vpop.f32.mrb[43].mxu0  ;;  %v2524_v48 = vpop.eup %2523  ;;  %1743 = vst [vmem:[#allocation2 + $0x80] sm:$0xff] %v2522_v44  ;;  %v1407_v49 = vadd.f32 %v1406_v47, %v3764_v54  ;;  %2545 = vpow2.f32 %v1798_v38  ;;  %v1803_v53 = vmul.f32 -1.442695, %v1405_v45 }
 0x4b1   :  { %v2526_v51 = vpop.eup %2525  ;;  %1742 = vst [vmem:[#allocation2 + $0x78] sm:$0xff] %v2524_v48  ;;  %v1805_v57 = vmul.f32 -1.442695, %v1499_v46  ;;  %2547 = vpow2.f32 %v1797_v41  ;;  %v1410_v60 = vpop.f32.mrb[44].mxu1 }
 0x4b2   :  { %v2528_v58 = vpop.eup %2527  ;;  %1744 = vst [vmem:[#allocation2 + $0x88] sm:$0xff] %v2526_v51  ;;  %v1804_v59 = vmul.f32 -1.442695, %v1407_v49  ;;  %v1503_v61 = vpop.f32.mrb[44].mxu0  ;;  %2549 = vpow2.f32 %v1803_v53  ;;  %v1411_v23 = vadd.f32 %v1410_v60, %v3755_v11 }
 0x4b3   :  { %v2530_v62 = vpop.eup %2529  ;;  %1748 = vst [vmem:[#allocation2 + $0xa8] sm:$0xff] %v2528_v58  ;;  %v1412_v63 = vpop.f32.mrb[45].mxu1  ;;  %2551 = vpow2.f32 %v1805_v57  ;;  %v1504_v27 = vadd.f32 %v1503_v61, %v3761_v21 }
 0x4b4   :  { %v2191_v0 = vpop.f32.mrb[45].mxu0  ;;  %v2532_v1 = vpop.eup %2531  ;;  %v1645_v2 = vadd.f32 1.0, %v2530_v62  ;;  %2553 = vpow2.f32 %v1804_v59  ;;  %v1413_v29 = vadd.f32 %v1412_v63, %v3764_v54  ;;  %v1810_v34 = vmul.f32 -1.442695, %v1411_v23 }
 0x4b5   :  { %v2534_v3 = vpop.eup %2533  ;;  %v1644_v4 = vadd.f32 1.0, %v2532_v1  ;;  %v1416_v7 = vpop.f32.mrb[46].mxu1  ;;  %v1812_v39 = vmul.f32 -1.442695, %v1504_v27 }
 0x4b6   :  { %v2536_v5 = vpop.eup %2535  ;;  %2555 = vrcp.f32 %v1645_v2  ;;  %v1646_v6 = vadd.f32 1.0, %v2534_v3  ;;  %v1508_v8 = vpop.f32.mrb[46].mxu0  ;;  %v1417_v50 = vadd.f32 %v1416_v7, %v3755_v11  ;;  %v1811_v43 = vmul.f32 -1.442695, %v1413_v29 }
 0x4b7   :  { %v2538_v9 = vpop.eup %2537  ;;  %2557 = vrcp.f32 %v1644_v4  ;;  %v1650_v10 = vadd.f32 1.0, %v2536_v5  ;;  %v1418_v12 = vpop.f32.mrb[47].mxu1  ;;  %v1509_v35 = vadd.f32 %v1508_v8, %v3761_v21 }
 0x4b8   :  { %v2194_v13 = vpop.f32.mrb[47].mxu0  ;;  %v2540_v14 = vpop.eup %2539  ;;  %2559 = vrcp.f32 %v1646_v6  ;;  %v1652_v15 = vadd.f32 1.0, %v2538_v9  ;;  %v1419_v41 = vadd.f32 %v1418_v12, %v3764_v54  ;;  %v1817_v46 = vmul.f32 -1.442695, %v1417_v50 }
 0x4b9   :  { %v2542_v16 = vpop.eup %2541  ;;  %2561 = vrcp.f32 %v1650_v10  ;;  %v1651_v17 = vadd.f32 1.0, %v2540_v14  ;;  %v1422_v19 = vpop.f32.mrb[48].mxu1  ;;  %v1819_v48 = vmul.f32 -1.442695, %v1509_v35 }
 0x4ba   :  { %v2544_v18 = vpop.eup %2543  ;;  %2563 = vrcp.f32 %v1652_v15  ;;  %v1653_v40 = vadd.f32 1.0, %v2542_v16  ;;  %v1513_v20 = vpop.f32.mrb[48].mxu0  ;;  %v1423_v44 = vadd.f32 %v1422_v19, %v3755_v11  ;;  %v1818_v53 = vmul.f32 -1.442695, %v1419_v41 }
 0x4bb   :  { %v2546_v37 = vpop.eup %2545  ;;  %2565 = vrcp.f32 %v1651_v17  ;;  %v1626_v22 = vadd.f32 1.0, %v2544_v18  ;;  %v1424_v24 = vpop.f32.mrb[49].mxu1  ;;  %v1514_v47 = vadd.f32 %v1513_v20, %v3761_v21 }
 0x4bc   :  { %v2197_v55 = vpop.f32.mrb[49].mxu0  ;;  %v2548_v25 = vpop.eup %2547  ;;  %2567 = vrcp.f32 %v1653_v40  ;;  %v1628_v26 = vadd.f32 1.0, %v2546_v37  ;;  %v1425_v49 = vadd.f32 %v1424_v24, %v3764_v54  ;;  %v1824_v11 = vmul.f32 -1.442695, %v1423_v44 }
 0x4bd   :  { %v2550_v56 = vpop.eup %2549  ;;  %2569 = vrcp.f32 %v1626_v22  ;;  %v1627_v28 = vadd.f32 1.0, %v2548_v25  ;;  %v1826_v59 = vmul.f32 -1.442695, %v1514_v47 }
 0x4be   :  { %v2552_v30 = vpop.eup %2551  ;;  %2571 = vrcp.f32 %v1628_v26  ;;  %v1633_v31 = vadd.f32 1.0, %v2550_v56  ;;  %v1825_v21 = vmul.f32 -1.442695, %v1425_v49 }
 0x4bf   :  { %v2554_v32 = vpop.eup %2553  ;;  %2573 = vrcp.f32 %v1627_v28  ;;  %v1635_v33 = vadd.f32 1.0, %v2552_v30 }
 0x4c0   :  { %v2556_v36 = vpop.eup %2555  ;;  %2575 = vrcp.f32 %v1633_v31  ;;  %v1634_v38 = vadd.f32 1.0, %v2554_v32 }
 0x4c1   :  { %v2558_v42 = vpop.eup %2557  ;;  %1750 = vst [vmem:[#allocation2 + $0xb8] sm:$0xff] %v2556_v36  ;;  %2577 = vrcp.f32 %v1635_v33 }
 0x4c2   :  { %v2560_v45 = vpop.eup %2559  ;;  %1749 = vst [vmem:[#allocation2 + $0xb0] sm:$0xff] %v2558_v42  ;;  %2579 = vrcp.f32 %v1634_v38 }
 0x4c3   :  { %v2562_v52 = vpop.eup %2561  ;;  %1751 = vst [vmem:[#allocation2 + $0xc0] sm:$0xff] %v2560_v45  ;;  %2581 = vpow2.f32 %v1810_v34 }
 0x4c4   :  { %v2564_v51 = vpop.eup %2563  ;;  %1755 = vst [vmem:[#allocation2 + $0xe0] sm:$0xff] %v2562_v52  ;;  %2583 = vpow2.f32 %v1812_v39 }
 0x4c5   :  { %v2566_v57 = vpop.eup %2565  ;;  %1757 = vst [vmem:[#allocation2 + $0xf0] sm:$0xff] %v2564_v51  ;;  %2585 = vpow2.f32 %v1811_v43 }
 0x4c6   :  { %v2568_v58 = vpop.eup %2567  ;;  %1756 = vst [vmem:[#allocation2 + $0xe8] sm:$0xff] %v2566_v57  ;;  %2587 = vpow2.f32 %v1817_v46 }
 0x4c7   :  { %v2570_v60 = vpop.eup %2569  ;;  %1758 = vst [vmem:[#allocation2 + $0xf8] sm:$0xff] %v2568_v58  ;;  %2589 = vpow2.f32 %v1819_v48 }
 0x4c8   :  { %v2572_v61 = vpop.eup %2571  ;;  %1731 = vst [vmem:[#allocation2 + $0x20] sm:$0xff] %v2570_v60  ;;  %2591 = vpow2.f32 %v1818_v53 }
 0x4c9   :  { %v2574_v54 = vpop.eup %2573  ;;  %1733 = vst.msk [vmem:[#allocation2 + $0x30] sm:$0xff] %vm191_vm0, %v2572_v61  ;;  %2593 = vpow2.f32 %v1824_v11 }
 0x4ca   :  { %v2576_v62 = vpop.eup %2575  ;;  %1732 = vst [vmem:[#allocation2 + $0x28] sm:$0xff] %v2574_v54  ;;  %2595 = vpow2.f32 %v1826_v59 }
 0x4cb   :  { %v2578_v63 = vpop.eup %2577  ;;  %1738 = vst [vmem:[#allocation2 + $0x58] sm:$0xff] %v2576_v62  ;;  %2597 = vpow2.f32 %v1825_v21 }
 0x4cc   :  { %v2580_v0 = vpop.eup %2579  ;;  %1740 = vst.msk [vmem:[#allocation2 + $0x68] sm:$0xff] %vm191_vm0, %v2578_v63 }
 0x4cd   :  { %v2582_v1 = vpop.eup %2581  ;;  %1739 = vst [vmem:[#allocation2 + $0x60] sm:$0xff] %v2580_v0 }
 0x4ce   :  { %v2584_v2 = vpop.eup %2583  ;;  %v1640_v3 = vadd.f32 1.0, %v2582_v1 }
 0x4cf   :  { %v2586_v4 = vpop.eup %2585  ;;  %v1642_v5 = vadd.f32 1.0, %v2584_v2 }
 0x4d0   :  { %v2588_v6 = vpop.eup %2587  ;;  %2599 = vrcp.f32 %v1640_v3  ;;  %v1641_v7 = vadd.f32 1.0, %v2586_v4 }
 0x4d1   :  { %v2590_v8 = vpop.eup %2589  ;;  %2601 = vrcp.f32 %v1642_v5  ;;  %v1647_v9 = vadd.f32 1.0, %v2588_v6 }
 0x4d2   :  { %v2592_v10 = vpop.eup %2591  ;;  %2603 = vrcp.f32 %v1641_v7  ;;  %v1649_v12 = vadd.f32 1.0, %v2590_v8 }
 0x4d3   :  { %v2594_v13 = vpop.eup %2593  ;;  %2605 = vrcp.f32 %v1647_v9  ;;  %v1648_v14 = vadd.f32 1.0, %v2592_v10 }
 0x4d4   :  { %v2596_v15 = vpop.eup %2595  ;;  %2607 = vrcp.f32 %v1649_v12  ;;  %v1654_v16 = vadd.f32 1.0, %v2594_v13 }
 0x4d5   :  { %v2598_v17 = vpop.eup %2597  ;;  %2609 = vrcp.f32 %v1648_v14  ;;  %v1656_v18 = vadd.f32 1.0, %v2596_v15 }
 0x4d6   :  { %2611 = vrcp.f32 %v1654_v16  ;;  %v1655_v40 = vadd.f32 1.0, %v2598_v17 }
 0x4d7   :  { %2613 = vrcp.f32 %v1656_v18 }
 0x4d8   :  { %2615 = vrcp.f32 %v1655_v40 }
 0x4da   :  { %v2600_v19 = vpop.eup %2599 }
 0x4db   :  { %v2602_v20 = vpop.eup %2601  ;;  %1745 = vst [vmem:[#allocation2 + $0x90] sm:$0xff] %v2600_v19 }
 0x4dc   :  { %v2604_v37 = vpop.eup %2603  ;;  %1747 = vst.msk [vmem:[#allocation2 + $0xa0] sm:$0xff] %vm191_vm0, %v2602_v20 }
 0x4dd   :  { %v2606_v22 = vpop.eup %2605  ;;  %1746 = vst [vmem:[#allocation2 + $0x98] sm:$0xff] %v2604_v37 }
 0x4de   :  { %v2608_v23 = vpop.eup %2607  ;;  %1752 = vst [vmem:[#allocation2 + $0xc8] sm:$0xff] %v2606_v22 }
 0x4df   :  { %v2610_v24 = vpop.eup %2609  ;;  %1754 = vst.msk [vmem:[#allocation2 + $0xd8] sm:$0xff] %vm191_vm0, %v2608_v23 }
 0x4e0   :  { %v2612_v55 = vpop.eup %2611  ;;  %1753 = vst [vmem:[#allocation2 + $0xd0] sm:$0xff] %v2610_v24 }
 0x4e1   :  { %v2614_v25 = vpop.eup %2613  ;;  %1759 = vst [vmem:[#allocation2 + $0x100] sm:$0xff] %v2612_v55 }
 0x4e2   :  { %v2616_v26 = vpop.eup %2615  ;;  %1761 = vst.msk [vmem:[#allocation2 + $0x110] sm:$0xff] %vm191_vm0, %v2614_v25 }
 0x4e3   :  { %1760 = vst [vmem:[#allocation2 + $0x108] sm:$0xff] %v2616_v26 }
 0x4e4   :  { %2628 = shalt.err (!%p2625_p4)
}
 0x4e5   :  { %s2629_s24 = scalar_lea.hbm %s3813_s15, 4480 }
 0x4e6   :  { %p2630_p5 = scmp.ne.s32.totalorder %s3813_s15, %s2629_s24  ;;  %p2633_p6 = scmp.lt.u32.totalorder %s2629_s24, %s3813_s15 }
 0x4e8   :  { %p2635_p7 = pnand %p2633_p6, %p2630_p5 }
 0x4ea   :  { %2638 = shalt.err (!%p2635_p7)
}
 0x4eb   :  { %s2645_s26 = smov 896   ;;  %s2646_s2 = smov 56  }
 0x4ec   :  { %1773 = dma.vmem_to_hbm [thread:$0]  %s1768_s22, 4480, %s3813_s15, [#allocation3], %s2645_s26, %s2645_s26, %s2646_s2  }
 0x4ed   :  { %2639 = dma.done.wait [#allocation3], 4480  }
 0x4ee   :  { %2640 = vsyncadd [#allocation3], 4294962816 }
 0x4ef   :  { %1777 = vsyncpa [#allocation3], 1 }

</bundles_post_ra>
